<compile_context>
chip_gen: v7x
topology: tpu7x:2x2x1
jax: 0.10.0
libtpu: 0.0.40
codegen_flags: <defaults>
</compile_context>

<pallas_src>
import numpy as np
import jax
import jax.numpy as jnp
from jax import lax
from jax.experimental import pallas as pl
from jax.experimental.pallas import tpu as pltpu


def _band_weights_cat(w_oihw, W):
    """For a 3x3/pad=1 conv, fold the 3 kx taps + channel mixing into one
    banded matrix per ky:
        M[ky][s*Cin+ci, w*Cout+co] = w[co, ci, ky, (s-w)+1]   for |s-w| <= 1
    (zero otherwise), so out_row(h) = sum_ky x_row(h+ky-1) @ M[ky] with OOB
    rows treated as zero.  The three ky matrices are concatenated along the
    output axis so each conv is a single MXU matmul followed by two
    rolled-and-masked adds."""
    Cout, Cin, KH, KW = w_oihw.shape
    assert KH == 3 and KW == 3, "only 3x3 convs (default config) supported"
    wt = jnp.transpose(w_oihw, (2, 3, 1, 0)).astype(jnp.float32)  # (ky,kx,Cin,Cout)
    sel = np.zeros((3, W, W), np.float32)                         # (kx, s, w)
    for d in range(3):
        dx = d - 1
        for w in range(W):
            if 0 <= w + dx < W:
                sel[d, w + dx, w] = 1.0
    m = jnp.einsum("ydio,dsw->ysiwo", wt, jnp.asarray(sel))       # (ky,s,Cin,w,Cout)
    m = m.reshape(3, W * Cin, W * Cout)
    return jnp.concatenate([m[0], m[1], m[2]], axis=1)            # (W*Cin, 3*W*Cout)


def _make_kernel(Nb, H, WCi, WCo, Gp, inv_cnt, eps):
    NbH = Nb * H

    def kernel(x_ref, xres_ref, m1_ref, m2_ref, pv_ref, gmapt_ref, gmap_ref, o_ref):
        # Per-image halo masks for the rolled ky=0/2 conv taps: within each
        # image, row h=0 has no row above and row h=H-1 has no row below.
        h_idx = lax.broadcasted_iota(jnp.int32, (Nb, H, WCo), 1).reshape(NbH, WCo)
        mask_top = h_idx != 0
        mask_bot = h_idx != (H - 1)

        def conv3x3(xb_bf16, m_ref, bias_row):
            # One fused MXU matmul (f32 accumulation) against the 3-tap banded
            # weights; the ky=0/2 column blocks are shifted with XLU rolls.
            p = jnp.dot(xb_bf16, m_ref[...], preferred_element_type=jnp.float32)
            q0 = p[:, 0:WCo]              # ky=0 tap: out[h] needs x_row[h-1]
            q1 = p[:, WCo:2 * WCo]        # ky=1 tap: same row
            q2 = p[:, 2 * WCo:3 * WCo]    # ky=2 tap: out[h] needs x_row[h+1]
            acc = q1 + jnp.where(mask_top, pltpu.roll(q0, shift=1, axis=0), 0.0)
            acc = acc + jnp.where(mask_bot,
                                  pltpu.roll(q2, shift=NbH - 1, axis=0), 0.0)
            return acc + bias_row         # (1, WCo) sublane-broadcast bias

        def gn_relu(z, gamma_row, beta_row):
            # Per-image, per-group stats: sublane reduce + stacked gather /
            # broadcast matmuls, then one fused scale/shift/ReLU pass.
            z3 = z.reshape(Nb, H, WCo)
            s1 = jnp.sum(z3, axis=1)                                # (Nb, WCo)
            s2 = jnp.sum(z3 * z3, axis=1)                           # (Nb, WCo)
            gs = jnp.dot(jnp.concatenate([s1, s2], axis=0), gmapt_ref[...],
                         preferred_element_type=jnp.float32)        # (2*Nb, Gp)
            mean = gs[0:Nb] * inv_cnt
            # NOTE: E[z^2]-E[z]^2 variance in f32; fine for post-conv
            # activations with eps=1e-5.  Padded group columns (G..Gp-1) are
            # all-zero in gmapt/gmap, so their rsqrt(eps) never leaks below.
            var = gs[Nb:2 * Nb] * inv_cnt - mean * mean
            rstd = lax.rsqrt(var + eps)
            mr = jnp.dot(jnp.concatenate([mean, rstd], axis=0), gmap_ref[...],
                         preferred_element_type=jnp.float32)        # (2*Nb, WCo)
            scale = mr[Nb:2 * Nb] * gamma_row                        # rstd_v*gamma
            shift = beta_row - mr[0:Nb] * scale                      # beta-mean*s
            out3 = jnp.maximum(z3 * scale[:, None, :] + shift[:, None, :], 0.0)
            return out3.reshape(NbH, WCo)

        # ---- conv1 -> GN1 -> ReLU -> conv2 -> GN2 -> ReLU --------------------
        y = gn_relu(conv3x3(x_ref[...], m1_ref, pv_ref[0:1, :]),
                    pv_ref[1:2, :], pv_ref[2:3, :])
        y = gn_relu(conv3x3(y.astype(jnp.bfloat16), m2_ref, pv_ref[3:4, :]),
                    pv_ref[4:5, :], pv_ref[5:6, :])

        # ---- residual (precomputed truncate/zero-pad) + ReLU ------------------
        o_ref[...] = jnp.maximum(xres_ref[...] + y, 0.0)

    return kernel


def residual_block_pallas(x_nchw, params, *, eps=1e-5):
    N, Cin, H, W = x_nchw.shape
    Cout = params["w1"].shape[0]
    assert Cout % 8 == 0 and Cout >= 8, "GroupNorm: planes must be a multiple of 8"
    assert H % 8 == 0, "H must be a multiple of 8 for (8,128) sublane tiling"
    G = Cout // 8                     # num_groups = planes // 8
    cg = Cout // G                    # channels per group (= 8)
    Gp = ((G + 7) // 8) * 8           # pad group axis to a multiple of 8
    WCi, WCo = W * Cin, W * Cout

    # Grid: keep >=2 parallel steps when possible (v7x has 2 TensorCores); all
    # images within a step are batched into one (Nb*H, .) matmul LHS.
    nsteps = 2 if (N % 2 == 0 and N >= 2) else 1
    Nb = N // nsteps
    NbH = Nb * H

    # ---- activations: NCHW -> lane-dense (N*H, W*C) rows ---------------------
    x_nhwc = jnp.transpose(x_nchw, (0, 2, 3, 1)).astype(jnp.float32)
    x_rows = x_nhwc.reshape(N * H, WCi).astype(jnp.bfloat16)       # conv1 LHS

    # residual channel truncate / zero-pad, precomputed in the output layout
    cmin = min(Cin, Cout)
    xres = jnp.zeros((N, H, W, Cout), jnp.float32).at[..., :cmin].set(
        x_nhwc[..., :cmin])
    xres_rows = xres.reshape(N * H, WCo)

    # ---- banded conv weights, 3 ky taps fused along the output axis ----------
    m1 = _band_weights_cat(params["w1"], W).astype(jnp.bfloat16)   # (WCi, 3*WCo)
    m2 = _band_weights_cat(params["w2"], W).astype(jnp.bfloat16)   # (WCo, 3*WCo)

    # ---- packed per-channel vectors: b1,g1,be1,b2,g2,be2 (+2 zero pad rows) ---
    def tile_c(v):   # per-channel vector -> (1, W*Cout) lane vector
        return jnp.tile(v.astype(jnp.float32).reshape(1, Cout), (1, W))
    pv = jnp.concatenate(
        [tile_c(params[k]) for k in ("b1", "g1", "be1", "b2", "g2", "be2")]
        + [jnp.zeros((2, WCo), jnp.float32)], axis=0)              # (8, WCo)

    # group-membership one-hot (Gp, WCo) and its transpose
    gmap_np = np.zeros((Gp, WCo), np.float32)
    for co in range(Cout):
        gmap_np[co // cg, np.arange(W) * Cout + co] = 1.0
    gmap = jnp.asarray(gmap_np)
    gmapt = jnp.asarray(gmap_np.T)

    inv_cnt = 1.0 / float(H * W * cg)
    kernel = _make_kernel(Nb, H, WCi, WCo, Gp, inv_cnt, eps)

    def bcast(shape):   # grid-invariant (broadcast) input
        return pl.BlockSpec(shape, lambda i: (0,) * len(shape))

    # TODO(synk): if scaled to large W*C, mark the broadcast weights with
    #   pipeline_mode=pl.Buffered(1) and set vmem_limit_bytes explicitly; the
    #   banded weights grow as 3*(W*C)^2 and with default double-buffering
    #   would first hit v7x's 64 MiB VMEM.
    out_rows = pl.pallas_call(
        kernel,
        out_shape=jax.ShapeDtypeStruct((N * H, WCo), jnp.float32),
        grid=(nsteps,),
        in_specs=[
            pl.BlockSpec((NbH, WCi), lambda i: (i, 0)),      # x rows (bf16)
            pl.BlockSpec((NbH, WCo), lambda i: (i, 0)),      # residual rows (f32)
            bcast((WCi, 3 * WCo)),                           # conv1 banded weights
            bcast((WCo, 3 * WCo)),                           # conv2 banded weights
            bcast((8, WCo)),                                 # packed b/gamma/beta
            bcast((WCo, Gp)),                                # group gather map
            bcast((Gp, WCo)),                                # group broadcast map
        ],
        out_specs=pl.BlockSpec((NbH, WCo), lambda i: (i, 0)),
        compiler_params=pltpu.CompilerParams(
            dimension_semantics=("parallel",)),
    )(x_rows, xres_rows, m1, m2, pv, gmapt, gmap)

    return out_rows.reshape(N, H, W, Cout).transpose(0, 3, 1, 2)


def residual_block_ref(x, p, eps=1e-5):
    """Pure-JAX reference matching the PyTorch forward (NCHW, default config)."""
    Cout = p["w1"].shape[0]
    Cin = x.shape[1]
    G = Cout // 8

    def conv(z, w, b):
        y = lax.conv_general_dilated(
            z, w, (1, 1), ((1, 1), (1, 1)),
            dimension_numbers=("NCHW", "OIHW", "NCHW"),
            precision=lax.Precision.HIGHEST)
        return y + b[None, :, None, None]

    def gn(z, gamma, beta):
        n, c, h, w = z.shape
        zg = z.reshape(n, G, c // G, h, w)
        mu = zg.mean(axis=(2, 3, 4), keepdims=True)
        var = ((zg - mu) ** 2).mean(axis=(2, 3, 4), keepdims=True)
        zn = ((zg - mu) / jnp.sqrt(var + eps)).reshape(n, c, h, w)
        return zn * gamma[None, :, None, None] + beta[None, :, None, None]

    y = jax.nn.relu(gn(conv(x, p["w1"], p["b1"]), p["g1"], p["be1"]))
    y = jax.nn.relu(gn(conv(y, p["w2"], p["b2"]), p["g2"], p["be2"]))
    if Cout < Cin:
        xr = x[:, :Cout]
    elif Cout > Cin:
        pad = jnp.zeros((x.shape[0], Cout - Cin, x.shape[2], x.shape[3]), x.dtype)
        xr = jnp.concatenate([x, pad], axis=1)
    else:
        xr = x
    return jax.nn.relu(xr + y)


if __name__ == "__main__":
    # ResidualBlock(in_planes=8, planes=16, norm_fn='group', stride=1, kernel_size=1)
    N, Cin, Cout, H, W = 4, 8, 16, 16, 16
    key = jax.random.PRNGKey(0)
    keys = jax.random.split(key, 9)
    x = jax.random.normal(keys[0], (N, Cin, H, W), jnp.float32)
    params = dict(
        w1=0.1 * jax.random.normal(keys[1], (Cout, Cin, 3, 3), jnp.float32),
        b1=0.1 * jax.random.normal(keys[2], (Cout,), jnp.float32),
        g1=1.0 + 0.1 * jax.random.normal(keys[3], (Cout,), jnp.float32),
        be1=0.1 * jax.random.normal(keys[4], (Cout,), jnp.float32),
        w2=0.1 * jax.random.normal(keys[5], (Cout, Cout, 3, 3), jnp.float32),
        b2=0.1 * jax.random.normal(keys[6], (Cout,), jnp.float32),
        g2=1.0 + 0.1 * jax.random.normal(keys[7], (Cout,), jnp.float32),
        be2=0.1 * jax.random.normal(keys[8], (Cout,), jnp.float32),
    )

    out = jax.block_until_ready(residual_block_pallas(x, params))
    ref = jax.block_until_ready(residual_block_ref(x, params))

    # Tolerance accommodates bf16 MXU conv inputs vs. the f32 HIGHEST-precision
    # XLA conv used in the reference.
    np.testing.assert_allclose(np.asarray(out), np.asarray(ref),
                               rtol=3e-2, atol=3e-2)
    print("KERNEL_OK")
</pallas_src>

<mosaic_0001>
module attributes {stable_mosaic.version = 11 : i64} {
  func.func @kernel(%arg0: i32, %arg1: memref<32x128xbf16, #tpu.memory_space<vmem>>, %arg2: memref<32x256xf32, #tpu.memory_space<vmem>>, %arg3: memref<128x768xbf16, #tpu.memory_space<vmem>>, %arg4: memref<256x768xbf16, #tpu.memory_space<vmem>>, %arg5: memref<8x256xf32, #tpu.memory_space<vmem>>, %arg6: memref<256x8xf32, #tpu.memory_space<vmem>>, %arg7: memref<8x256xf32, #tpu.memory_space<vmem>>, %arg8: memref<32x256xf32, #tpu.memory_space<vmem>>) attributes {dimension_semantics = [#tpu.dimension_semantics<parallel>], iteration_bounds = array<i64: 2>, scalar_prefetch = 0 : i64, scratch_operands = 0 : i64, tpu.core_type = #tpu.core_type<tc>, window_params = [{transform_indices = @transform_0, window_bounds = array<i64: 32, 128>}, {transform_indices = @transform_1, window_bounds = array<i64: 32, 256>}, {pipeline_mode = #tpu.pipeline_mode<synchronous>, transform_indices = @transform_2, window_bounds = array<i64: 128, 768>}, {pipeline_mode = #tpu.pipeline_mode<synchronous>, transform_indices = @transform_3, window_bounds = array<i64: 256, 768>}, {pipeline_mode = #tpu.pipeline_mode<synchronous>, transform_indices = @transform_4, window_bounds = array<i64: 8, 256>}, {pipeline_mode = #tpu.pipeline_mode<synchronous>, transform_indices = @transform_5, window_bounds = array<i64: 256, 8>}, {pipeline_mode = #tpu.pipeline_mode<synchronous>, transform_indices = @transform_6, window_bounds = array<i64: 8, 256>}, {transform_indices = @transform_7, window_bounds = array<i64: 32, 256>}]} {
    %0 = tpu.iota {dimensions = array<i32: 1>} : vector<2x16x256xi32>
    %1 = vector.shape_cast %0 : vector<2x16x256xi32> to vector<32x256xi32>
    %c0_i32 = arith.constant 0 : i32
    %2 = vector.broadcast %c0_i32 : i32 to vector<32x256xi32>
    %3 = arith.cmpi ne, %1, %2 : vector<32x256xi32>
    %c15_i32 = arith.constant 15 : i32
    %4 = vector.broadcast %c15_i32 : i32 to vector<32x256xi32>
    %5 = arith.cmpi ne, %1, %4 : vector<32x256xi32>
    %c0 = arith.constant 0 : index
    %c0_0 = arith.constant 0 : index
    %6 = vector.load %arg1[%c0, %c0_0] : memref<32x128xbf16, #tpu.memory_space<vmem>>, vector<32x128xbf16>
    %c0_1 = arith.constant 0 : index
    %c0_2 = arith.constant 0 : index
    %7 = vector.load %arg5[%c0_1, %c0_2] : memref<8x256xf32, #tpu.memory_space<vmem>>, vector<1x256xf32>
    %c0_3 = arith.constant 0 : index
    %c0_4 = arith.constant 0 : index
    %8 = vector.load %arg3[%c0_3, %c0_4] : memref<128x768xbf16, #tpu.memory_space<vmem>>, vector<128x768xbf16>
    %cst = arith.constant dense<0.000000e+00> : vector<32x768xf32>
    %9 = tpu.matmul %6, %8, %cst {dimension_numbers = #tpu.dot_dimension_numbers<[1], [0], [0], [1], [0, 0, 1, 1], [], []>} : vector<32x128xbf16>, vector<128x768xbf16>, vector<32x768xf32> -> vector<32x768xf32>
    %10 = vector.extract_strided_slice %9 {offsets = [0, 0], sizes = [32, 256], strides = [1, 1]} : vector<32x768xf32> to vector<32x256xf32>
    %11 = vector.extract_strided_slice %9 {offsets = [0, 256], sizes = [32, 256], strides = [1, 1]} : vector<32x768xf32> to vector<32x256xf32>
    %12 = vector.extract_strided_slice %9 {offsets = [0, 512], sizes = [32, 256], strides = [1, 1]} : vector<32x768xf32> to vector<32x256xf32>
    %c1_i32 = arith.constant 1 : i32
    %13 = tpu.dynamic_rotate %10 by %c1_i32 dim 0 : vector<32x256xf32>, i32 -> vector<32x256xf32>
    %cst_5 = arith.constant 0.000000e+00 : f32
    %14 = vector.broadcast %cst_5 : f32 to vector<32x256xf32>
    %15 = arith.select %3, %13, %14 : vector<32x256xi1>, vector<32x256xf32>
    %16 = arith.addf %11, %15 : vector<32x256xf32>
    %c31_i32 = arith.constant 31 : i32
    %17 = tpu.dynamic_rotate %12 by %c31_i32 dim 0 : vector<32x256xf32>, i32 -> vector<32x256xf32>
    %cst_6 = arith.constant 0.000000e+00 : f32
    %18 = vector.broadcast %cst_6 : f32 to vector<32x256xf32>
    %19 = arith.select %5, %17, %18 : vector<32x256xi1>, vector<32x256xf32>
    %20 = arith.addf %16, %19 : vector<32x256xf32>
    %21 = vector.broadcast %7 : vector<1x256xf32> to vector<32x256xf32>
    %22 = arith.addf %20, %21 : vector<32x256xf32>
    %c1 = arith.constant 1 : index
    %c0_7 = arith.constant 0 : index
    %23 = vector.load %arg5[%c1, %c0_7] : memref<8x256xf32, #tpu.memory_space<vmem>>, vector<1x256xf32>
    %c2 = arith.constant 2 : index
    %c0_8 = arith.constant 0 : index
    %24 = vector.load %arg5[%c2, %c0_8] : memref<8x256xf32, #tpu.memory_space<vmem>>, vector<1x256xf32>
    %25 = vector.shape_cast %22 : vector<32x256xf32> to vector<2x16x256xf32>
    %cst_9 = arith.constant dense<0.000000e+00> : vector<2x256xf32>
    %26 = vector.multi_reduction <add>, %25, %cst_9 [1] : vector<2x16x256xf32> to vector<2x256xf32>
    %27 = arith.mulf %25, %25 : vector<2x16x256xf32>
    %cst_10 = arith.constant dense<0.000000e+00> : vector<2x256xf32>
    %28 = vector.multi_reduction <add>, %27, %cst_10 [1] : vector<2x16x256xf32> to vector<2x256xf32>
    %29 = tpu.concatenate %26, %28 in 0 : vector<2x256xf32>, vector<2x256xf32> -> vector<4x256xf32>
    %c0_11 = arith.constant 0 : index
    %c0_12 = arith.constant 0 : index
    %30 = vector.load %arg6[%c0_11, %c0_12] : memref<256x8xf32, #tpu.memory_space<vmem>>, vector<256x8xf32>
    %cst_13 = arith.constant dense<0.000000e+00> : vector<4x8xf32>
    %31 = tpu.matmul %29, %30, %cst_13 {dimension_numbers = #tpu.dot_dimension_numbers<[1], [0], [0], [1], [0, 0, 1, 1], [], []>} : vector<4x256xf32>, vector<256x8xf32>, vector<4x8xf32> -> vector<4x8xf32>
    %32 = vector.extract_strided_slice %31 {offsets = [0, 0], sizes = [2, 8], strides = [1, 1]} : vector<4x8xf32> to vector<2x8xf32>
    %cst_14 = arith.constant 4.8828125E-4 : f32
    %33 = vector.broadcast %cst_14 : f32 to vector<2x8xf32>
    %34 = arith.mulf %32, %33 : vector<2x8xf32>
    %35 = vector.extract_strided_slice %31 {offsets = [2, 0], sizes = [2, 8], strides = [1, 1]} : vector<4x8xf32> to vector<2x8xf32>
    %cst_15 = arith.constant 4.8828125E-4 : f32
    %36 = vector.broadcast %cst_15 : f32 to vector<2x8xf32>
    %37 = arith.mulf %35, %36 : vector<2x8xf32>
    %38 = arith.mulf %34, %34 : vector<2x8xf32>
    %39 = arith.subf %37, %38 : vector<2x8xf32>
    %cst_16 = arith.constant 9.99999974E-6 : f32
    %40 = vector.broadcast %cst_16 : f32 to vector<2x8xf32>
    %41 = arith.addf %39, %40 : vector<2x8xf32>
    %42 = math.rsqrt %41 : vector<2x8xf32>
    %43 = tpu.concatenate %34, %42 in 0 : vector<2x8xf32>, vector<2x8xf32> -> vector<4x8xf32>
    %c0_17 = arith.constant 0 : index
    %c0_18 = arith.constant 0 : index
    %44 = vector.load %arg7[%c0_17, %c0_18] : memref<8x256xf32, #tpu.memory_space<vmem>>, vector<8x256xf32>
    %cst_19 = arith.constant dense<0.000000e+00> : vector<4x256xf32>
    %45 = tpu.matmul %43, %44, %cst_19 {dimension_numbers = #tpu.dot_dimension_numbers<[1], [0], [0], [1], [0, 0, 1, 1], [], []>} : vector<4x8xf32>, vector<8x256xf32>, vector<4x256xf32> -> vector<4x256xf32>
    %46 = vector.extract_strided_slice %45 {offsets = [2, 0], sizes = [2, 256], strides = [1, 1]} : vector<4x256xf32> to vector<2x256xf32>
    %47 = vector.broadcast %23 : vector<1x256xf32> to vector<2x256xf32>
    %48 = arith.mulf %46, %47 : vector<2x256xf32>
    %49 = vector.extract_strided_slice %45 {offsets = [0, 0], sizes = [2, 256], strides = [1, 1]} : vector<4x256xf32> to vector<2x256xf32>
    %50 = arith.mulf %49, %48 : vector<2x256xf32>
    %51 = vector.broadcast %24 : vector<1x256xf32> to vector<2x256xf32>
    %52 = arith.subf %51, %50 : vector<2x256xf32>
    %53 = vector.shape_cast %48 : vector<2x256xf32> to vector<2x1x256xf32>
    %54 = vector.broadcast %53 : vector<2x1x256xf32> to vector<2x16x256xf32>
    %55 = arith.mulf %25, %54 : vector<2x16x256xf32>
    %56 = vector.shape_cast %52 : vector<2x256xf32> to vector<2x1x256xf32>
    %57 = vector.broadcast %56 : vector<2x1x256xf32> to vector<2x16x256xf32>
    %58 = arith.addf %55, %57 : vector<2x16x256xf32>
    %cst_20 = arith.constant 0.000000e+00 : f32
    %59 = vector.broadcast %cst_20 : f32 to vector<2x16x256xf32>
    %60 = arith.maximumf %58, %59 : vector<2x16x256xf32>
    %61 = vector.shape_cast %60 : vector<2x16x256xf32> to vector<32x256xf32>
    %62 = arith.truncf %61 : vector<32x256xf32> to vector<32x256xbf16>
    %c3 = arith.constant 3 : index
    %c0_21 = arith.constant 0 : index
    %63 = vector.load %arg5[%c3, %c0_21] : memref<8x256xf32, #tpu.memory_space<vmem>>, vector<1x256xf32>
    %c0_22 = arith.constant 0 : index
    %c0_23 = arith.constant 0 : index
    %64 = vector.load %arg4[%c0_22, %c0_23] : memref<256x768xbf16, #tpu.memory_space<vmem>>, vector<256x768xbf16>
    %cst_24 = arith.constant dense<0.000000e+00> : vector<32x768xf32>
    %65 = tpu.matmul %62, %64, %cst_24 {dimension_numbers = #tpu.dot_dimension_numbers<[1], [0], [0], [1], [0, 0, 1, 1], [], []>} : vector<32x256xbf16>, vector<256x768xbf16>, vector<32x768xf32> -> vector<32x768xf32>
    %66 = vector.extract_strided_slice %65 {offsets = [0, 0], sizes = [32, 256], strides = [1, 1]} : vector<32x768xf32> to vector<32x256xf32>
    %67 = vector.extract_strided_slice %65 {offsets = [0, 256], sizes = [32, 256], strides = [1, 1]} : vector<32x768xf32> to vector<32x256xf32>
    %68 = vector.extract_strided_slice %65 {offsets = [0, 512], sizes = [32, 256], strides = [1, 1]} : vector<32x768xf32> to vector<32x256xf32>
    %c1_i32_25 = arith.constant 1 : i32
    %69 = tpu.dynamic_rotate %66 by %c1_i32_25 dim 0 : vector<32x256xf32>, i32 -> vector<32x256xf32>
    %cst_26 = arith.constant 0.000000e+00 : f32
    %70 = vector.broadcast %cst_26 : f32 to vector<32x256xf32>
    %71 = arith.select %3, %69, %70 : vector<32x256xi1>, vector<32x256xf32>
    %72 = arith.addf %67, %71 : vector<32x256xf32>
    %c31_i32_27 = arith.constant 31 : i32
    %73 = tpu.dynamic_rotate %68 by %c31_i32_27 dim 0 : vector<32x256xf32>, i32 -> vector<32x256xf32>
    %cst_28 = arith.constant 0.000000e+00 : f32
    %74 = vector.broadcast %cst_28 : f32 to vector<32x256xf32>
    %75 = arith.select %5, %73, %74 : vector<32x256xi1>, vector<32x256xf32>
    %76 = arith.addf %72, %75 : vector<32x256xf32>
    %77 = vector.broadcast %63 : vector<1x256xf32> to vector<32x256xf32>
    %78 = arith.addf %76, %77 : vector<32x256xf32>
    %c4 = arith.constant 4 : index
    %c0_29 = arith.constant 0 : index
    %79 = vector.load %arg5[%c4, %c0_29] : memref<8x256xf32, #tpu.memory_space<vmem>>, vector<1x256xf32>
    %c5 = arith.constant 5 : index
    %c0_30 = arith.constant 0 : index
    %80 = vector.load %arg5[%c5, %c0_30] : memref<8x256xf32, #tpu.memory_space<vmem>>, vector<1x256xf32>
    %81 = vector.shape_cast %78 : vector<32x256xf32> to vector<2x16x256xf32>
    %cst_31 = arith.constant dense<0.000000e+00> : vector<2x256xf32>
    %82 = vector.multi_reduction <add>, %81, %cst_31 [1] : vector<2x16x256xf32> to vector<2x256xf32>
    %83 = arith.mulf %81, %81 : vector<2x16x256xf32>
    %cst_32 = arith.constant dense<0.000000e+00> : vector<2x256xf32>
    %84 = vector.multi_reduction <add>, %83, %cst_32 [1] : vector<2x16x256xf32> to vector<2x256xf32>
    %85 = tpu.concatenate %82, %84 in 0 : vector<2x256xf32>, vector<2x256xf32> -> vector<4x256xf32>
    %c0_33 = arith.constant 0 : index
    %c0_34 = arith.constant 0 : index
    %86 = vector.load %arg6[%c0_33, %c0_34] : memref<256x8xf32, #tpu.memory_space<vmem>>, vector<256x8xf32>
    %cst_35 = arith.constant dense<0.000000e+00> : vector<4x8xf32>
    %87 = tpu.matmul %85, %86, %cst_35 {dimension_numbers = #tpu.dot_dimension_numbers<[1], [0], [0], [1], [0, 0, 1, 1], [], []>} : vector<4x256xf32>, vector<256x8xf32>, vector<4x8xf32> -> vector<4x8xf32>
    %88 = vector.extract_strided_slice %87 {offsets = [0, 0], sizes = [2, 8], strides = [1, 1]} : vector<4x8xf32> to vector<2x8xf32>
    %cst_36 = arith.constant 4.8828125E-4 : f32
    %89 = vector.broadcast %cst_36 : f32 to vector<2x8xf32>
    %90 = arith.mulf %88, %89 : vector<2x8xf32>
    %91 = vector.extract_strided_slice %87 {offsets = [2, 0], sizes = [2, 8], strides = [1, 1]} : vector<4x8xf32> to vector<2x8xf32>
    %cst_37 = arith.constant 4.8828125E-4 : f32
    %92 = vector.broadcast %cst_37 : f32 to vector<2x8xf32>
    %93 = arith.mulf %91, %92 : vector<2x8xf32>
    %94 = arith.mulf %90, %90 : vector<2x8xf32>
    %95 = arith.subf %93, %94 : vector<2x8xf32>
    %cst_38 = arith.constant 9.99999974E-6 : f32
    %96 = vector.broadcast %cst_38 : f32 to vector<2x8xf32>
    %97 = arith.addf %95, %96 : vector<2x8xf32>
    %98 = math.rsqrt %97 : vector<2x8xf32>
    %99 = tpu.concatenate %90, %98 in 0 : vector<2x8xf32>, vector<2x8xf32> -> vector<4x8xf32>
    %c0_39 = arith.constant 0 : index
    %c0_40 = arith.constant 0 : index
    %100 = vector.load %arg7[%c0_39, %c0_40] : memref<8x256xf32, #tpu.memory_space<vmem>>, vector<8x256xf32>
    %cst_41 = arith.constant dense<0.000000e+00> : vector<4x256xf32>
    %101 = tpu.matmul %99, %100, %cst_41 {dimension_numbers = #tpu.dot_dimension_numbers<[1], [0], [0], [1], [0, 0, 1, 1], [], []>} : vector<4x8xf32>, vector<8x256xf32>, vector<4x256xf32> -> vector<4x256xf32>
    %102 = vector.extract_strided_slice %101 {offsets = [2, 0], sizes = [2, 256], strides = [1, 1]} : vector<4x256xf32> to vector<2x256xf32>
    %103 = vector.broadcast %79 : vector<1x256xf32> to vector<2x256xf32>
    %104 = arith.mulf %102, %103 : vector<2x256xf32>
    %105 = vector.extract_strided_slice %101 {offsets = [0, 0], sizes = [2, 256], strides = [1, 1]} : vector<4x256xf32> to vector<2x256xf32>
    %106 = arith.mulf %105, %104 : vector<2x256xf32>
    %107 = vector.broadcast %80 : vector<1x256xf32> to vector<2x256xf32>
    %108 = arith.subf %107, %106 : vector<2x256xf32>
    %109 = vector.shape_cast %104 : vector<2x256xf32> to vector<2x1x256xf32>
    %110 = vector.broadcast %109 : vector<2x1x256xf32> to vector<2x16x256xf32>
    %111 = arith.mulf %81, %110 : vector<2x16x256xf32>
    %112 = vector.shape_cast %108 : vector<2x256xf32> to vector<2x1x256xf32>
    %113 = vector.broadcast %112 : vector<2x1x256xf32> to vector<2x16x256xf32>
    %114 = arith.addf %111, %113 : vector<2x16x256xf32>
    %cst_42 = arith.constant 0.000000e+00 : f32
    %115 = vector.broadcast %cst_42 : f32 to vector<2x16x256xf32>
    %116 = arith.maximumf %114, %115 : vector<2x16x256xf32>
    %117 = vector.shape_cast %116 : vector<2x16x256xf32> to vector<32x256xf32>
    %c0_43 = arith.constant 0 : index
    %c0_44 = arith.constant 0 : index
    %118 = vector.load %arg2[%c0_43, %c0_44] : memref<32x256xf32, #tpu.memory_space<vmem>>, vector<32x256xf32>
    %119 = arith.addf %118, %117 : vector<32x256xf32>
    %cst_45 = arith.constant 0.000000e+00 : f32
    %120 = vector.broadcast %cst_45 : f32 to vector<32x256xf32>
    %121 = arith.maximumf %119, %120 : vector<32x256xf32>
    %c0_46 = arith.constant 0 : index
    %c0_47 = arith.constant 0 : index
    %122 = vector.load %arg8[%c0_46, %c0_47] : memref<32x256xf32, #tpu.memory_space<vmem>>, vector<32x256xf32>
    tpu.vector_store %arg8[%c0_46, %c0_47], %121 {strides = array<i32>} : memref<32x256xf32, #tpu.memory_space<vmem>>, vector<32x256xf32>,
    return
  }
  func.func @transform_0(%arg0: i32) -> (i32, i32) {
    %c0_i32 = arith.constant 0 : i32
    %c0_i32_0 = arith.constant 0 : i32
    return %arg0, %c0_i32 : i32, i32
  }
  func.func @transform_1(%arg0: i32) -> (i32, i32) {
    %c0_i32 = arith.constant 0 : i32
    %c0_i32_0 = arith.constant 0 : i32
    return %arg0, %c0_i32 : i32, i32
  }
  func.func @transform_2(%arg0: i32) -> (i32, i32) {
    %c0_i32 = arith.constant 0 : i32
    %c0_i32_0 = arith.constant 0 : i32
    %c0_i32_1 = arith.constant 0 : i32
    return %c0_i32, %c0_i32_0 : i32, i32
  }
  func.func @transform_3(%arg0: i32) -> (i32, i32) {
    %c0_i32 = arith.constant 0 : i32
    %c0_i32_0 = arith.constant 0 : i32
    %c0_i32_1 = arith.constant 0 : i32
    return %c0_i32, %c0_i32_0 : i32, i32
  }
  func.func @transform_4(%arg0: i32) -> (i32, i32) {
    %c0_i32 = arith.constant 0 : i32
    %c0_i32_0 = arith.constant 0 : i32
    %c0_i32_1 = arith.constant 0 : i32
    return %c0_i32, %c0_i32_0 : i32, i32
  }
  func.func @transform_5(%arg0: i32) -> (i32, i32) {
    %c0_i32 = arith.constant 0 : i32
    %c0_i32_0 = arith.constant 0 : i32
    %c0_i32_1 = arith.constant 0 : i32
    return %c0_i32, %c0_i32_0 : i32, i32
  }
  func.func @transform_6(%arg0: i32) -> (i32, i32) {
    %c0_i32 = arith.constant 0 : i32
    %c0_i32_0 = arith.constant 0 : i32
    %c0_i32_1 = arith.constant 0 : i32
    return %c0_i32, %c0_i32_0 : i32, i32
  }
  func.func @transform_7(%arg0: i32) -> (i32, i32) {
    %c0_i32 = arith.constant 0 : i32
    %c0_i32_0 = arith.constant 0 : i32
    return %arg0, %c0_i32 : i32, i32
  }
}

</mosaic_0001>

<bundles_post_ra>
// kernel: tpu_custom_call.1
= control target key start
LH: loop header
LB: loop body
LE: loop exit
PB: predicated region body
PF: predicated region fallthrough
CT: control target
= control target key end

     0   :  { %12 = vsyncpa [#allocation3], 0  ;;  %s4137_s0 = inlined_call_operand.vmem [shape: bf16[64,128], index: 0, kind: input, shape index: {}]   ;;  %s4138_s1 = inlined_call_operand.vmem [shape: f32[64,256], index: 1, kind: input, shape index: {}]   ;;  %s4139_s2 = inlined_call_operand.hbm [shape: bf16[128,768], index: 2, kind: input, shape index: {}]   ;;  %s4140_s3 = inlined_call_operand.hbm [shape: bf16[256,768], index: 3, kind: input, shape index: {}]   ;;  %s4141_s4 = inlined_call_operand.vmem [shape: f32[8,256], index: 4, kind: input, shape index: {}]   ;;  %s4142_s5 = inlined_call_operand.vmem [shape: f32[256,8], index: 5, kind: input, shape index: {}]   ;;  %s4143_s6 = inlined_call_operand.vmem [shape: f32[8,256], index: 6, kind: input, shape index: {}]   ;;  %s4144_s7 = inlined_call_operand.hbm [shape: f32[64,256], index: 7, kind: output, shape index: {}]  }
   0x1   :  { %13 = vsyncpa [#allocation6], 0 }
   0x2   :  { %14 = vsyncpa [#allocation4], 0 }
   0x3   :  { %16 = vsyncpa [#allocation4 + $0x1], 0  ;;  %s3448_s24 = smov 0   ;;  %s3450_s25 = smov 0  }
   0x4   :  { %s3452_s26 = smov 0   ;;  %s3454_s27 = smov 0  }
   0x5 LB: > { %s3469_s28 = sadd.s32 4294967295, %s3396_s27   ;;  %s2671_s29 = sadd.s32 4294967294, %s3396_s27   ;;  %s3396_s27 = sphi %s3454_s27, %s4164_s27   ;;  %s3392_s26 = sphi %s3452_s26, %s4163_s26   ;;  %s3388_s25 = sphi %s3450_s25, %s4162_s25   ;;  %s3384_s24 = sphi %s3448_s24, %s4161_s24  }
   0x6   : > { %s3473_s30 = sadd.s32 1, %s3396_s27   ;;  %s186_s8 = sadd.s32 1, %s3392_s26 }
   0x7   : > { %s183_s9 = ssub.s32 %s3396_s27, %s3473_s30  ;;  %p196_p0 = scmp.ne.s32.totalorder %s3392_s26, %s3388_s25 }
   0x8   : > { %p184_p1 = scmp.eq.s32.totalorder %s183_s9, 0  ;;  %p197_p2 = scmp.eq.s32.totalorder %s3469_s28, 1 }
   0x9   : > { %p202_p3 = scmp.ne.s32.totalorder %s3388_s25, %s3384_s24  ;;  %p203_p4 = scmp.eq.s32.totalorder %s2671_s29, 1 }
   0xa   : > { %s3484_s10 = scalar_select %p184_p1, %s3392_s26, %s186_s8  }
   0xb   : > { %p3486_p5 = por %p197_p2, %p196_p0  ;;  %p3490_p6 = por %p203_p4, %p202_p3 }
   0xc   : > { %4148 = sst [smem:[#allocation11_spill]] %s3484_s10  ;;  %p2672_p7 = scmp.ge.s32.totalorder %s3396_s27, 1 }
   0xd   : > { %s4149_s11 = scalar_select %p3486_p5, 1, 0 }
   0xe   : > { %s4150_s12 = scalar_select %p3490_p6, 1, 0 }
   0xf   : > { %p210_p8 = scmp.lt.s32.totalorder %s3396_s27, 3  ;;  %p4145_p9 = scmp.eq.s32.totalorder %s3469_s28, 0 }
  0x10   : > { %s3398_s14 = smov [#allocation2]   ;;  %s3399_s17 = smov [#allocation5]  }
  0x11   : > { %p3497_p10 = pnand %p2672_p7, %p210_p8  ;;  %s222_s15 = sshll.u32 %s3398_s14, 4  ;;  %s223_s15 = int_to_ptr.vmem [resolvable:$true] %s222_s15 }
  0x12   : > { %s235_s18 = sshll.u32 %s3399_s17, 4  ;;  %s3270_s21 = scalar_lea.hbm %s4139_s2, 6144  ;;  %s3509_s18 = int_to_ptr.vmem [resolvable:$true] %s235_s18 }
  0x13   : > { %s4151_s13 = scalar_select %p3497_p10, 1, 0 }
  0x14   : > { %p2991_p11 = pneg %p3497_p10  ;;  %p3271_p13 = scmp.ne.s32.totalorder %s4139_s2, %s3270_s21 }
  0x15   : > { %p3277_p3 = scmp.lt.u32.totalorder %s3270_s21, %s4139_s2 }
  0x16   : > { %p3505_p12 = pnand %p4145_p9, %p2991_p11 }
  0x18   : > { %p3272_p0 = pneg %p3505_p12 }
  0x1a   : > { %p3273_p1 = pnand %p3272_p0, %p3271_p13 }
  0x1c   : > { %p3274_p2 = pneg %p3273_p1 }
  0x1e   : > { %p3279_p4 = pnand %p3277_p3, %p3274_p2 }
  0x20   : > { %3282 = shalt.err (!%p3279_p4)
}
  0x21   : > { %s3283_s9 = scalar_lea.vmem %s223_s15, 6144  ;;  %p3291_p9 = scmp.lt.s32.totalorder %s223_s15, %s223_s15 }
  0x22   : > { %p3284_p7 = scmp.ne.s32.totalorder %s223_s15, %s3283_s9  ;;  %p3292_p6 = scmp.lt.s32.totalorder %s3283_s9, %s3283_s9 }
  0x24   : > { %p3286_p8 = pnand %p3284_p7, %p3272_p0  ;;  %p3293_p5 = por %p3292_p6, %p3291_p9 }
  0x26   : > { %p3287_p11 = pneg %p3286_p8 }
  0x28   : > { %p3294_p10 = pnand %p3293_p5, %p3287_p11 }
  0x2a   : > { %3297 = shalt.err (!%p3294_p10)
}
  0x2b   : > { %s3400_s14 = smov 384   ;;  %s3401_s17 = smov 24  }
  0x2c   : > { %2994 = dma.hbm_to_vmem [thread:$0]  (!%p3505_p12), %s4139_s2, 6144, %s223_s15, [#allocation3], %s3400_s14, %s3400_s14, %s3401_s17  }
  0x2d   : > { %s3298_s23 = scalar_lea.hbm %s4140_s3, 12288 }
  0x2e   : > { %p3299_p13 = scmp.ne.s32.totalorder %s4140_s3, %s3298_s23  ;;  %p3305_p9 = scmp.lt.u32.totalorder %s3298_s23, %s4140_s3 }
  0x30   : > { %p3301_p5 = pnand %p3299_p13, %p3272_p0 }
  0x32   : > { %p3302_p6 = pneg %p3301_p5 }
  0x34   : > { %p3307_p10 = pnand %p3305_p9, %p3302_p6 }
  0x36   : > { %3310 = shalt.err (!%p3307_p10)
}
  0x37   : > { %s3311_s15 = scalar_lea.vmem %s3509_s18, 12288  ;;  %p3319_p4 = scmp.lt.s32.totalorder %s3509_s18, %s3509_s18 }
  0x38   : > { %p3312_p1 = scmp.ne.s32.totalorder %s3509_s18, %s3311_s15  ;;  %p3320_p7 = scmp.lt.s32.totalorder %s3311_s15, %s3311_s15 }
  0x3a   : > { %p3314_p2 = pnand %p3312_p1, %p3272_p0  ;;  %p3321_p8 = por %p3320_p7, %p3319_p4 }
  0x3c   : > { %p3315_p3 = pneg %p3314_p2 }
  0x3e   : > { %p3322_p11 = pnand %p3321_p8, %p3315_p3 }
  0x40   : > { %3325 = shalt.err (!%p3322_p11)
}
  0x41   : > { %2997 = dma.hbm_to_vmem [thread:$0]  (!%p3505_p12), %s4140_s3, 12288, %s3509_s18, [#allocation6], %s3400_s14, %s3400_s14, %s3401_s17  }
  0x42   : > { %p4153_p13 = scmp.ne.s32.totalorder %s4151_s13, 0 }
  0x43   : > { %p4154_p5 = scmp.eq.s32.totalorder (!%p4153_p13), %s3469_s28, 0 }
  0x44   : > { %279 = sbr.rel (%p4153_p13) target bundleno = 1676 (0x68c), region = 48 }
  0x4b   : > { %3371 = dma.done.wait (%p4154_p5), [#allocation3], 6144   ;;  %p4155_p0 = pmov %p4154_p5 }
  0x4d   : > { %3373 = vsyncadd (%p4155_p0), [#allocation3], 4294961152  ;;  %p4156_p6 = pmov %p4155_p0 }
  0x4e   : > { %p4157_p9 = pmov %p4155_p0 }
  0x4f   : > { %3375 = dma.done.wait (%p4156_p6), [#allocation6], 12288  }
  0x50   : > { %3377 = vsyncadd (%p4157_p9), [#allocation6], 4294955008  ;;  %v3402_v0 = vmov 0   ;;  %s2680_s13 = sshll.u32 %s3469_s28, 2  ;;  %v3048_v1 = vld [vmem:[#allocation2 + $0x4] ss:$24 sps:$4 sm:$0xff]  }
  0x51   : > { %680 = vmatprep.mubr.bf16.mxu1 %v3402_v0  ;;  %786 = vmatprep.mubr.bf16.mxu0 %v3402_v0  ;;  %v3050_v2 = vld [vmem:[#allocation2] ss:$24 sps:$4 sm:$0xff]   ;;  %v3051_v3 = vld [vmem:[#allocation2 + $0x34] ss:$24 sps:$4 sm:$0xff]   ;;  %p322_p12 = scmp.lt.s32.totalorder %s2680_s13, 7  ;;  %vm973_vm4 = vcmask 1043459  }
  0x52   : > { %648 = vmatprep.subr.bf16.mxu1 %v3048_v1  ;;  %v3053_v4 = vld [vmem:[#allocation2 + $0x30] ss:$24 sps:$4 sm:$0xff]   ;;  %v3054_v5 = vld [vmem:[#allocation2 + $0x64] ss:$24 sps:$4 sm:$0xff]   ;;  %v3056_v6 = vld [vmem:[#allocation2 + $0x60] ss:$24 sps:$4 sm:$0xff]  }
  0x53   : > { %649 = vmatpush1.bf16.msra.mxu1 %v3050_v2  ;;  %s4166_s13 = smov (!%p322_p12, %s2680_s13), 7  ;;  %v3063_v7 = vld [vmem:[#allocation2 + $0x14] ss:$24 sps:$4 sm:$0xff]   ;;  %v3067_v9 = vld [vmem:[#allocation2 + $0x10] ss:$24 sps:$4 sm:$0xff]   ;;  %v997_v51 = vld [vmem:[%s4142_s5 + $0x80] sm:$0xff] }
  0x54   : > { %650 = vmatprep.subr.bf16.mxu1 %v3051_v3  ;;  %v3057_v8 = vld [vmem:[#allocation2 + $0x94] ss:$24 sps:$4 sm:$0xff]   ;;  %754 = vmatprep.subr.bf16.mxu0 %v3063_v7  ;;  %v3069_v10 = vld [vmem:[#allocation2 + $0x44] ss:$24 sps:$4 sm:$0xff]   ;;  %s2681_s16 = sshll.u32 %s4166_s13, 2  ;;  %vm964_vm5 = vcmask 1041409  }
  0x55   : > { %755 = vmatpush1.bf16.msra.mxu0 %v3067_v9  ;;  %v3059_v11 = vld [vmem:[#allocation2 + $0x90] ss:$24 sps:$4 sm:$0xff]   ;;  %v3060_v12 = vld [vmem:[#allocation2 + $0xc4] ss:$24 sps:$4 sm:$0xff]   ;;  %v3073_v13 = vld [vmem:[#allocation2 + $0x40] ss:$24 sps:$4 sm:$0xff]   ;;  %s3577_s17 = scalar_lea.vmem %s4137_s0, %s2681_s16 }
  0x56   : > { %756 = vmatprep.subr.bf16.mxu0 %v3069_v10  ;;  %v3075_v14 = vld [vmem:[#allocation2 + $0x74] ss:$24 sps:$4 sm:$0xff]   ;;  %v3062_v15 = vld [vmem:[#allocation2 + $0xc0] ss:$24 sps:$4 sm:$0xff]   ;;  %v3079_v16 = vld [vmem:[#allocation2 + $0x70] ss:$24 sps:$4 sm:$0xff]  }
  0x57   : > { %651 = vmatpush1.bf16.msra.mxu1 %v3053_v4  ;;  %v3081_v17 = vld [vmem:[#allocation2 + $0xa4] ss:$24 sps:$4 sm:$0xff]   ;;  %v3065_v18 = vld [vmem:[#allocation2 + $0xf4] ss:$24 sps:$4 sm:$0xff]   ;;  %v3068_v19 = vld [vmem:[#allocation2 + $0xf0] ss:$24 sps:$4 sm:$0xff]  }
  0x58   : > { %652 = vmatprep.subr.bf16.mxu1 %v3054_v5  ;;  %v3087_v20 = vld [vmem:[#allocation2 + $0xa0] ss:$24 sps:$4 sm:$0xff]   ;;  %v3088_v21 = vld [vmem:[#allocation2 + $0xd4] ss:$24 sps:$4 sm:$0xff]   ;;  %v3071_v22 = vld [vmem:[#allocation2 + $0x124] ss:$24 sps:$4 sm:$0xff]  }
  0x59   : > { %757 = vmatpush1.bf16.msra.mxu0 %v3073_v13  ;;  %v3074_v23 = vld [vmem:[#allocation2 + $0x120] ss:$24 sps:$4 sm:$0xff]   ;;  %v3093_v24 = vld [vmem:[#allocation2 + $0xd0] ss:$24 sps:$4 sm:$0xff]   ;;  %v3094_v25 = vld [vmem:[#allocation2 + $0x104] ss:$24 sps:$4 sm:$0xff]  }
  0x5a   : > { %758 = vmatprep.subr.bf16.mxu0 %v3075_v14  ;;  %v3077_v26 = vld [vmem:[#allocation2 + $0x154] ss:$24 sps:$4 sm:$0xff]   ;;  %v3080_v27 = vld [vmem:[#allocation2 + $0x150] ss:$24 sps:$4 sm:$0xff]   ;;  %v3100_v28 = vld [vmem:[#allocation2 + $0x100] ss:$24 sps:$4 sm:$0xff]  }
  0x5b   : > { %653 = vmatpush1.bf16.msra.mxu1 %v3056_v6  ;;  %v3101_v29 = vld [vmem:[#allocation2 + $0x134] ss:$24 sps:$4 sm:$0xff]   ;;  %v3083_v31 = vld [vmem:[%s3577_s17] sm:$0xff]   ;;  %v3106_v32 = vld [vmem:[#allocation2 + $0x130] ss:$24 sps:$4 sm:$0xff]   ;;  %vm978_vm6 = vcmask 1041408  }
  0x5c   : > { %654 = vmatprep.subr.bf16.mxu1 %v3057_v8  ;;  %v3086_v30 = vld [vmem:[#allocation2 + $0xc] ss:$24 sps:$4 sm:$0xff]   ;;  %v3084_v33 = vld [vmem:[#allocation2 + $0x8] ss:$24 sps:$4 sm:$0xff]   ;;  %v3092_v34 = vld [vmem:[#allocation2 + $0x3c] ss:$24 sps:$4 sm:$0xff]  }
  0x5d   : > { %759 = vmatpush1.bf16.msra.mxu0 %v3079_v16  ;;  %v3107_v35 = vld [vmem:[#allocation2 + $0x164] ss:$24 sps:$4 sm:$0xff]   ;;  %v3090_v36 = vld [vmem:[#allocation2 + $0x38] ss:$24 sps:$4 sm:$0xff]   ;;  %v3096_v39 = vld [vmem:[%s3577_s17 + $0x8] sm:$0xff]   ;;  %vm1094_vm7 = vcmask 64512  }
  0x5e   : > { %760 = vmatprep.subr.bf16.mxu0 %v3081_v17  ;;  %v3112_v37 = vld [vmem:[#allocation2 + $0x160] ss:$24 sps:$4 sm:$0xff]   ;;  %v3099_v38 = vld [vmem:[#allocation2 + $0x6c] ss:$24 sps:$4 sm:$0xff]   ;;  %v3105_v41 = vld [vmem:[#allocation2 + $0x9c] ss:$24 sps:$4 sm:$0xff]  }
  0x5f   : > { %655 = vmatpush1.bf16.msra.mxu1 %v3059_v11  ;;  %v3097_v40 = vld [vmem:[#allocation2 + $0x68] ss:$24 sps:$4 sm:$0xff]   ;;  %v3103_v42 = vld [vmem:[#allocation2 + $0x98] ss:$24 sps:$4 sm:$0xff]   ;;  %v3111_v43 = vld [vmem:[#allocation2 + $0xcc] ss:$24 sps:$4 sm:$0xff]  }
  0x60   : > { %656 = vmatprep.subr.bf16.mxu1 %v3060_v12  ;;  %v3109_v44 = vld [vmem:[#allocation2 + $0xc8] ss:$24 sps:$4 sm:$0xff]   ;;  %v3115_v45 = vld [vmem:[#allocation2 + $0xfc] ss:$24 sps:$4 sm:$0xff]   ;;  %v3113_v46 = vld [vmem:[#allocation2 + $0xf8] ss:$24 sps:$4 sm:$0xff]  }
  0x61   : > { %761 = vmatpush1.bf16.msra.mxu0 %v3087_v20  ;;  %v3118_v47 = vld [vmem:[#allocation2 + $0x12c] ss:$24 sps:$4 sm:$0xff]   ;;  %v3116_v48 = vld [vmem:[#allocation2 + $0x128] ss:$24 sps:$4 sm:$0xff]   ;;  %v3121_v49 = vld [vmem:[#allocation2 + $0x15c] ss:$24 sps:$4 sm:$0xff]  }
  0x62   : > { %762 = vmatprep.subr.bf16.mxu0 %v3088_v21  ;;  %v3119_v50 = vld [vmem:[#allocation2 + $0x158] ss:$24 sps:$4 sm:$0xff]   ;;  %v998_v52 = vld [vmem:[%s4142_s5 + $0x88] sm:$0xff]  ;;  %v981_v54 = vld [vmem:[%s4142_s5] sm:$0xff]  ;;  %s2844_s16 = sshll.u32 %s4166_s13, 4  ;;  %s318_s18 = sand.u32 1, %s3388_s25  }
  0x63   : > { %657 = vmatpush1.bf16.msra.mxu1 %v3062_v15  ;;  %v3591_v53 = vpack.c.bf16 %v998_v52, %v997_v51  ;;  %v982_v55 = vld [vmem:[%s4142_s5 + $0x8] sm:$0xff]  ;;  %v999_v57 = vld [vmem:[%s4142_s5 + $0x90] sm:$0xff]  ;;  %v1000_v58 = vld [vmem:[%s4142_s5 + $0x98] sm:$0xff]  ;;  %s4061_s20 = scalar_lea.vmem %s4138_s1, %s2844_s16  ;;  %s4065_s13 = sshll.u32 %s318_s18, 6 }
  0x64   : > { %658 = vmatprep.subr.bf16.mxu1 %v3065_v18  ;;  %v3599_v56 = vpack.c.bf16 %v982_v55, %v981_v54  ;;  %v3609_v59 = vpack.c.bf16 %v1000_v58, %v999_v57  ;;  %v983_v60 = vld [vmem:[%s4142_s5 + $0x10] sm:$0xff]  ;;  %v984_v61 = vld [vmem:[%s4142_s5 + $0x18] sm:$0xff]  ;;  %v1001_v63 = vld [vmem:[%s4142_s5 + $0xa0] sm:$0xff]  ;;  %s2846_s21 = sshll.u32 %s3469_s28, 10  ;;  %s320_s22 = scalar_lea.vmem [#allocation7], %s4065_s13 }
  0x65   : > { %763 = vmatpush1.bf16.msra.mxu0 %v3093_v24  ;;  %v3617_v62 = vpack.c.bf16 %v984_v61, %v983_v60  ;;  %v985_v2 = vld [vmem:[%s4142_s5 + $0x20] sm:$0xff]  ;;  %v986_v3 = vld [vmem:[%s4142_s5 + $0x28] sm:$0xff]  ;;  %v1003_v5 = vld [vmem:[%s4142_s5 + $0xb0] sm:$0xff]  ;;  %s2575_s23 = sshll.u32 %s320_s22, 4  ;;  %s4090_s9 = scalar_lea.hbm %s4144_s7, %s2846_s21  ;;  %s4092_s23 = int_to_ptr.vmem [resolvable:$true] %s2575_s23 }
  0x66   : > { %764 = vmatprep.subr.bf16.mxu0 %v3094_v25  ;;  %v3635_v4 = vpack.c.bf16 %v986_v3, %v985_v2  ;;  %v1004_v6 = vld [vmem:[%s4142_s5 + $0xb8] sm:$0xff]  ;;  %v987_v8 = vld [vmem:[%s4142_s5 + $0x30] sm:$0xff]  ;;  %v1005_v11 = vld [vmem:[%s4142_s5 + $0xc0] sm:$0xff]  ;;  %s4096_s28 = scalar_lea.sflag [#allocation4], %s318_s18  ;;  %s3326_s15 = scalar_lea.vmem %s4092_s23, 1024 }
  0x67   : > { %659 = vmatpush1.bf16.msra.mxu1 %v3068_v19  ;;  %v3645_v7 = vpack.c.bf16 %v1004_v6, %v1003_v5  ;;  %v988_v9 = vld [vmem:[%s4142_s5 + $0x38] sm:$0xff]  ;;  %v1006_v12 = vld [vmem:[%s4142_s5 + $0xc8] sm:$0xff]  ;;  %v989_v14 = vld [vmem:[%s4142_s5 + $0x40] sm:$0xff]  ;;  %p3327_p10 = scmp.ne.s32.totalorder %s4092_s23, %s3326_s15  ;;  %p4158_p1 = scmp.ne.s32.totalorder %s4149_s11, 0 }
  0x68   : > { %660 = vmatprep.subr.bf16.mxu1 %v3071_v22  ;;  %v3653_v10 = vpack.c.bf16 %v988_v9, %v987_v8  ;;  %v3663_v13 = vpack.c.bf16 %v1006_v12, %v1005_v11  ;;  %v990_v15 = vld [vmem:[%s4142_s5 + $0x48] sm:$0xff]  ;;  %v1007_v17 = vld [vmem:[%s4142_s5 + $0xd0] sm:$0xff]  ;;  %v1008_v18 = vld [vmem:[%s4142_s5 + $0xd8] sm:$0xff]  ;;  %s3405_s10 = smov [#allocation7]  }
  0x69   : > { %765 = vmatpush1.bf16.msra.mxu0 %v3100_v28  ;;  %v3671_v16 = vpack.c.bf16 %v990_v15, %v989_v14  ;;  %v3681_v19 = vpack.c.bf16 %v1008_v18, %v1007_v17  ;;  %v991_v20 = vld [vmem:[%s4142_s5 + $0x50] sm:$0xff]  ;;  %v992_v21 = vld [vmem:[%s4142_s5 + $0x58] sm:$0xff]  ;;  %v1010_v24 = vld [vmem:[%s4142_s5 + $0xe8] sm:$0xff]  ;;  %p3328_p2 = pnand %p3327_p10, %p4158_p1  ;;  %s3330_s19 = sshll.u32 %s3405_s10, 4  ;;  %s3331_s19 = int_to_ptr.vmem [resolvable:$false] %s3330_s19 }
  0x6a   : > { %766 = vmatprep.subr.bf16.mxu0 %v3101_v29  ;;  %v3689_v22 = vpack.c.bf16 %v992_v21, %v991_v20  ;;  %v993_v25 = vld [vmem:[%s4142_s5 + $0x60] sm:$0xff]  ;;  %v1011_v28 = vld [vmem:[%s4142_s5 + $0xf0] sm:$0xff]  ;;  %v1012_v29 = vld [vmem:[%s4142_s5 + $0xf8] sm:$0xff]  ;;  %s3332_s16 = scalar_lea.vmem %s3331_s19, 2048  ;;  %p3333_p4 = scmp.lt.s32.totalorder %s4092_s23, %s3331_s19 }
  0x6b   : > { %661 = vmatpush1.bf16.msra.mxu1 %v3074_v23  ;;  %v1009_v23 = vld [vmem:[%s4142_s5 + $0xe0] sm:$0xff]  ;;  %p3329_p3 = pneg %p3328_p2  ;;  %p3334_p7 = scmp.lt.s32.totalorder %s3332_s16, %s3326_s15 }
  0x6c   : > { %662 = vmatprep.subr.bf16.mxu1 %v3077_v26  ;;  %v3702_v26 = vpack.c.bf16 %v1010_v24, %v1009_v23 }
  0x6d   : > { %767 = vmatpush1.bf16.msra.mxu0 %v3106_v32  ;;  %v995_v32 = vld [vmem:[%s4142_s5 + $0x70] sm:$0xff]  ;;  %p3335_p8 = por %p3334_p7, %p3333_p4 }
  0x6e   : > { %768 = vmatprep.subr.bf16.mxu0 %v3107_v35  ;;  %v336_v35 = vlaneseq }
  0x6f   : > { %663 = vmatpush1.bf16.msra.mxu1 %v3080_v27  ;;  %v994_v27 = vld [vmem:[%s4142_s5 + $0x68] sm:$0xff]  ;;  %p3336_p11 = pnand %p3335_p8, %p3329_p3 }
  0x70   : > { %701 = vmatprep.subr.bf16.mxu1 %v3086_v30  ;;  %v3713_v30 = vpack.c.bf16 %v994_v27, %v993_v25 }
  0x71   : > { %769 = vmatpush1.bf16.msra.mxu0 %v3112_v37 }
  0x72   : > { %681 = vmatmul.mubr.bf16.vlgmr.msra.gmra.mrb[0].mxu1 %v3083_v31 }
  0x73   : > { %702 = vmatpush1.bf16.msra.mxu1 %v3084_v33  ;;  %690 = vmatprep.mubr.bf16.mxu1 %v3402_v0  ;;  %v996_v33 = vld [vmem:[%s4142_s5 + $0x78] sm:$0xff] }
  0x74   : > { %703 = vmatprep.subr.bf16.mxu1 %v3092_v34  ;;  %787 = vmatmul.mubr.bf16.vlgmr.msra.gmra.mrb[0].mxu0 %v3083_v31  ;;  %v3725_v34 = vpack.c.bf16 %v996_v33, %v995_v32 }
  0x75   : > { %796 = vmatprep.mubr.bf16.mxu0 %v3402_v0 }
  0x77   : > { %704 = vmatpush1.bf16.msra.mxu1 %v3090_v36  ;;  %v3729_v36 = vshrl.u32 %v336_v35, 7 }
  0x78   : > { %705 = vmatprep.subr.bf16.mxu1 %v3099_v38 }
  0x79   : > { %vm815_vm0 = vcmp.lt.s32.totalorder %v3729_v36, 1  ;;  %vm848_vm1 = vcmp.lt.s32.totalorder %v3729_v36, 7  ;;  %vm339_vm2 = vcmp.ne.s32.totalorder %v3729_v36, 0 }
  0x7a   : > { %691 = vmatmul.mubr.bf16.gmra.mrb[4].mxu1 %v3096_v39 }
  0x7b   : > { %706 = vmatpush1.bf16.msra.mxu1 %v3097_v40  ;;  %733 = vmatprep.mubr.bf16.mxu1 %v3402_v0 }
  0x7c   : > { %707 = vmatprep.subr.bf16.mxu1 %v3105_v41  ;;  %797 = vmatmul.mubr.bf16.gmra.mrb[4].mxu0 %v3096_v39 }
  0x7f   : > { %708 = vmatpush1.bf16.msra.mxu1 %v3103_v42 }
  0x80   : > { %709 = vmatprep.subr.bf16.mxu1 %v3111_v43 }
  0x83   : > { %710 = vmatpush1.bf16.msra.mxu1 %v3109_v44 }
  0x84   : > { %711 = vmatprep.subr.bf16.mxu1 %v3115_v45 }
  0x87   : > { %712 = vmatpush1.bf16.msra.mxu1 %v3113_v46 }
  0x88   : > { %713 = vmatprep.subr.bf16.mxu1 %v3118_v47 }
  0x8b   : > { %714 = vmatpush1.bf16.msra.mxu1 %v3116_v48 }
  0x8c   : > { %715 = vmatprep.subr.bf16.mxu1 %v3121_v49 }
  0x8f   : > { %716 = vmatpush1.bf16.msra.mxu1 %v3119_v50 }
  0x90   : > { %2918 = vmatprep.subr.bf16.mxu1 %v3591_v53 }
  0x92   : > { %734 = vmatmul.mubr.bf16.vlgmr.msra.gmra.mrb[8].mxu1 %v3083_v31  ;;  %v3715_v31 = vpack.c.bf16 %v1012_v29, %v1011_v28 }
  0x93   : > { %743 = vmatprep.mubr.bf16.mxu1 %v3402_v0  ;;  %2920 = vmatpush3.bf16.msra.mxu1 %v3599_v56  ;;  %v1002_v0 = vld [vmem:[%s4142_s5 + $0xa8] sm:$0xff] }
  0x94   : > { %2922 = vmatprep.subr.bf16.mxu1 %v3609_v59  ;;  %v3627_v1 = vpack.c.bf16 %v1002_v0, %v1001_v63 }
  0x97   : > { %2924 = vmatpush3.bf16.msra.mxu1 %v3617_v62 }
  0x98   : > { %2926 = vmatprep.subr.bf16.mxu1 %v3627_v1 }
  0x9a   : > { %744 = vmatmul.mubr.bf16.gmra.mrb[12].mxu1 %v3096_v39 }
  0x9b   : > { %2928 = vmatpush3.bf16.msra.mxu1 %v3635_v4 }
  0x9c   : > { %2930 = vmatprep.subr.bf16.mxu1 %v3645_v7 }
  0x9f   : > { %2932 = vmatpush3.bf16.msra.mxu1 %v3653_v10 }
  0xa0   : > { %2934 = vmatprep.subr.bf16.mxu1 %v3663_v13 }
  0xa3   : > { %2936 = vmatpush3.bf16.msra.mxu1 %v3671_v16 }
  0xa4   : > { %2938 = vmatprep.subr.bf16.mxu1 %v3681_v19 }
  0xa7   : > { %2940 = vmatpush3.bf16.msra.mxu1 %v3689_v22 }
  0xa8   : > { %2942 = vmatprep.subr.bf16.mxu1 %v3702_v26 }
  0xab   : > { %2944 = vmatpush3.bf16.msra.mxu1 %v3713_v30 }
  0xac   : > { %2946 = vmatprep.subr.bf16.mxu1 %v3715_v31 }
  0xaf   : > { %2948 = vmatpush3.bf16.msra.mxu1 %v3725_v34 }
 0x145   : > { %v682_v37 = vpop.f32.mrb[0].mxu1 }
 0x146   : > { %v807_v38 = vrot.slane %v682_v37, 7  ;;  %v684_v39 = vpop.f32.mrb[1].mxu1 }
 0x147   : > { %v686_v40 = vpop.f32.mrb[2].mxu1  ;;  %v808_v43 = vrot.slane %v684_v39, 7  ;;  %v788_v47 = vpop.f32.mrb[0].mxu0  ;;  %v3771_v39 = vadd.s32 8, %v3729_v36 }
 0x148   : > { %v809_v41 = vrot.slane %v686_v40, 7  ;;  %v688_v42 = vpop.f32.mrb[3].mxu1  ;;  %v840_v49 = vrot.slane %v788_v47, 1  ;;  %v790_v50 = vpop.f32.mrb[1].mxu0 }
 0x149   : > { %v810_v44 = vrot.slane %v688_v42, 7  ;;  %v841_v54 = vrot.slane %v790_v50, 1  ;;  %v792_v55 = vpop.f32.mrb[2].mxu0  ;;  %v347_v40 = vld [vmem:[%s4141_s4] ss:$8 sm:$0x3] }
 0x14a   : > { %v820_v45 = vsel %vm815_vm0, %v807_v38, %v809_v41  ;;  %v842_v60 = vrot.slane %v792_v55, 1  ;;  %v794_v61 = vpop.f32.mrb[3].mxu0  ;;  %vm342_vm3 = vcmp.ne.s32.totalorder %v3771_v39, 15 }
 0x14b   : > { %v821_v46 = vsel %vm815_vm0, %v808_v43, %v810_v44  ;;  %v843_v2 = vrot.slane %v794_v61, 1 }
 0x14c   : > { %v853_v6 = vsel %vm848_vm1, %v840_v49, %v842_v60 }
 0x14d   : > { %v692_v48 = vpop.f32.mrb[4].mxu1  ;;  %v854_v11 = vsel %vm848_vm1, %v841_v54, %v843_v2 }
 0x14e   : > { %v811_v51 = vrot.slane %v692_v48, 7  ;;  %v694_v52 = vpop.f32.mrb[5].mxu1 }
 0x14f   : > { %v812_v57 = vrot.slane %v694_v52, 7  ;;  %v696_v58 = vpop.f32.mrb[6].mxu1  ;;  %v798_v17 = vpop.f32.mrb[4].mxu0 }
 0x150   : > { %v813_v63 = vrot.slane %v696_v58, 7  ;;  %v698_v0 = vpop.f32.mrb[7].mxu1  ;;  %v818_v3 = vsel %vm815_vm0, %v809_v41, %v811_v51  ;;  %v844_v18 = vrot.slane %v798_v17, 1  ;;  %v800_v20 = vpop.f32.mrb[5].mxu0  ;;  %v3777_v41 = vsub.s32 1, %v3729_v36 }
 0x151   : > { %v814_v5 = vrot.slane %v698_v0, 7  ;;  %v819_v8 = vsel %vm815_vm0, %v810_v44, %v812_v57  ;;  %v845_v21 = vrot.slane %v800_v20, 1  ;;  %v802_v23 = vpop.f32.mrb[6].mxu0 }
 0x152   : > { %v822_v9 = vsel %vm815_vm0, %v813_v63, %v807_v38  ;;  %v816_v12 = vsel %vm815_vm0, %v811_v51, %v813_v63  ;;  %v846_v24 = vrot.slane %v802_v23, 1  ;;  %v804_v25 = vpop.f32.mrb[7].mxu0  ;;  %v851_v27 = vsel %vm848_vm1, %v842_v60, %v844_v18 }
 0x153   : > { %v823_v14 = vsel %vm815_vm0, %v814_v5, %v808_v43  ;;  %v3753_v15 = vsel %vm815_vm0, %v812_v57, %v814_v5  ;;  %v847_v28 = vrot.slane %v804_v25, 1  ;;  %v852_v29 = vsel %vm848_vm1, %v843_v2, %v845_v21 }
 0x154   : > { %v849_v32 = vsel %vm848_vm1, %v844_v18, %v846_v24  ;;  %v855_v33 = vsel %vm848_vm1, %v846_v24, %v840_v49  ;;  %v3768_v38 = vsub.s32 0, %v3729_v36  ;;  %v824_v43 = vsel %vm339_vm2, %v822_v9, 0.0 }
 0x155   : > { %v850_v35 = vsel %vm848_vm1, %v845_v21, %v847_v28  ;;  %v856_v37 = vsel %vm848_vm1, %v847_v28, %v841_v54  ;;  %v825_v49 = vsel %vm339_vm2, %v823_v14, 0.0  ;;  %v881_v51 = vrot.slane %v347_v40, %v3777_v41 }
 0x156   : > { %v877_v47 = vrot.slane %v347_v40, %v3768_v38  ;;  %v859_v60 = vsel %vm342_vm3, %v851_v27, 0.0  ;;  %v860_v2 = vsel %vm342_vm3, %v852_v29, 0.0 }
 0x165   : > { %v735_v42 = vpop.f32.mrb[8].mxu1 }
 0x166   : > { %v832_v44 = vadd.f32 %v824_v43, %v735_v42  ;;  %v737_v48 = vpop.f32.mrb[9].mxu1  ;;  %v864_v43 = vsel %vm342_vm3, %v856_v37, 0.0 }
 0x167   : > { %v833_v50 = vadd.f32 %v825_v49, %v737_v48  ;;  %v739_v52 = vpop.f32.mrb[10].mxu1 }
 0x168   : > { %v865_v54 = vadd.f32 %v853_v6, %v832_v44  ;;  %v834_v55 = vadd.f32 %v820_v45, %v739_v52  ;;  %v741_v57 = vpop.f32.mrb[11].mxu1  ;;  %v828_v6 = vsel %vm339_vm2, %v818_v3, 0.0 }
 0x169   : > { %v866_v58 = vadd.f32 %v854_v11, %v833_v50  ;;  %v835_v61 = vadd.f32 %v821_v46, %v741_v57  ;;  %v829_v46 = vsel %vm339_vm2, %v819_v8, 0.0  ;;  %v863_v11 = vsel %vm342_vm3, %v855_v33, 0.0 }
 0x16a   : > { %v3789_v63 = vadd.f32 %v877_v47, %v865_v54  ;;  %v867_v0 = vadd.f32 %v859_v60, %v834_v55 }
 0x16b   : > { %v3793_v5 = vadd.f32 %v881_v51, %v866_v58  ;;  %v868_v9 = vadd.f32 %v860_v2, %v835_v61 }
 0x16c   : > { %v3795_v14 = vadd.f32 %v877_v47, %v867_v0  ;;  %v924_v18 = vmul.f32 %v3789_v63, %v3789_v63 }
 0x16d   : > { %v3797_v17 = vadd.f32 %v881_v51, %v868_v9  ;;  %v745_v45 = vpop.f32.mrb[12].mxu1  ;;  %v925_v3 = vmul.f32 %v3793_v5, %v3793_v5 }
 0x16e   : > { %v896_v20 = vadd.f32 %v3795_v14, %v3789_v63  ;;  %v926_v21 = vmul.f32 %v3795_v14, %v3795_v14  ;;  %v836_v23 = vadd.f32 %v828_v6, %v745_v45  ;;  %v747_v24 = vpop.f32.mrb[13].mxu1 }
 0x16f   : > { %v903_v8 = vadd.f32 %v3797_v17, %v3793_v5  ;;  %v927_v25 = vmul.f32 %v3797_v17, %v3797_v17  ;;  %v837_v27 = vadd.f32 %v829_v46, %v747_v24  ;;  %v749_v28 = vpop.f32.mrb[14].mxu1 }
 0x170   : > { %v932_v29 = vadd.f32 %v926_v21, %v924_v18  ;;  %v869_v33 = vadd.f32 %v849_v32, %v836_v23  ;;  %v838_v40 = vadd.f32 %v816_v12, %v749_v28  ;;  %v751_v42 = vpop.f32.mrb[15].mxu1  ;;  %v897_v52 = vrot.slane %v896_v20, 4 }
 0x171   : > { %v904_v44 = vrot.slane %v903_v8, 4  ;;  %v939_v48 = vadd.f32 %v927_v25, %v925_v3  ;;  %v870_v49 = vadd.f32 %v850_v35, %v837_v27  ;;  %v839_v50 = vadd.f32 %v3753_v15, %v751_v42 }
 0x172   : > { %v933_v54 = vrot.slane %v932_v29, 4  ;;  %v3820_v55 = vadd.f32 %v877_v47, %v869_v33  ;;  %v871_v57 = vadd.f32 %v863_v11, %v838_v40  ;;  %v898_v9 = vadd.f32 %v897_v52, %v896_v20 }
 0x173   : > { %v940_v58 = vrot.slane %v939_v48, 4  ;;  %v3822_v60 = vadd.f32 %v881_v51, %v870_v49  ;;  %v872_v61 = vadd.f32 %v864_v43, %v839_v50  ;;  %v905_v0 = vadd.f32 %v904_v44, %v903_v8 }
 0x174   : > { %v934_v32 = vadd.f32 %v933_v54, %v932_v29  ;;  %v3824_v12 = vadd.f32 %v877_v47, %v871_v57  ;;  %v928_v15 = vmul.f32 %v3820_v55, %v3820_v55  ;;  %v899_v3 = vrot.slane %v898_v9, 2 }
 0x175   : > { %v3826_v2 = vadd.f32 %v881_v51, %v872_v61  ;;  %v941_v37 = vadd.f32 %v940_v58, %v939_v48  ;;  %v929_v6 = vmul.f32 %v3822_v60, %v3822_v60  ;;  %v906_v23 = vrot.slane %v905_v0, 2 }
 0x176   : > { %v910_v35 = vadd.f32 %v3824_v12, %v3820_v55  ;;  %v930_v45 = vmul.f32 %v3824_v12, %v3824_v12  ;;  %v935_v46 = vrot.slane %v934_v32, 2  ;;  %v900_v49 = vadd.f32 %v899_v3, %v898_v9 }
 0x177   : > { %v917_v47 = vadd.f32 %v3826_v2, %v3822_v60  ;;  %v931_v51 = vmul.f32 %v3826_v2, %v3826_v2  ;;  %v942_v24 = vrot.slane %v941_v37, 2  ;;  %v907_v42 = vadd.f32 %v906_v23, %v905_v0 }
 0x178   : > { %v911_v11 = vrot.slane %v910_v35, 4  ;;  %v946_v18 = vadd.f32 %v930_v45, %v928_v15  ;;  %v936_v40 = vadd.f32 %v935_v46, %v934_v32 }
 0x179   : > { %v918_v20 = vrot.slane %v917_v47, 4  ;;  %v953_v21 = vadd.f32 %v931_v51, %v929_v6  ;;  %v943_v44 = vadd.f32 %v942_v24, %v941_v37  ;;  %v908_v45 = vrot.slane %v907_v42, 1 }
 0x17a   : > { %v912_v8 = vadd.f32 %v911_v11, %v910_v35  ;;  %v947_v25 = vrot.slane %v946_v18, 4  ;;  %v937_v61 = vrot.slane %v936_v40, 1  ;;  %v901_v51 = vrot.slane %v900_v49, 1 }
 0x17b   : > { %v919_v27 = vadd.f32 %v918_v20, %v917_v47  ;;  %v954_v28 = vrot.slane %v953_v21, 4  ;;  %v944_v6 = vrot.slane %v943_v44, 1  ;;  %v909_v46 = vadd.f32 %v908_v45, %v907_v42  ;;  %v3122_v42 = vld [vmem:[#allocation5] ss:$24 sps:$4 sm:$0xff]   ;;  %v3152_v45 = vld [vmem:[#allocation5 + $0xf0] ss:$24 sps:$4 sm:$0xff]  }
 0x17c   : > { %v913_v29 = vrot.slane %v912_v8, 2  ;;  %v948_v33 = vadd.f32 %v947_v25, %v946_v18  ;;  %v938_v37 = vadd.f32 %v937_v61, %v936_v40  ;;  %v902_v23 = vadd.f32 %v901_v51, %v900_v49  ;;  %v3128_v49 = vld [vmem:[#allocation5 + $0x30] ss:$24 sps:$4 sm:$0xff]   ;;  %v3146_v61 = vld [vmem:[#allocation5 + $0xc0] ss:$24 sps:$4 sm:$0xff]  }
 0x17d   : > { %v920_v43 = vrot.slane %v919_v27, 2  ;;  %v955_v48 = vadd.f32 %v954_v28, %v953_v21  ;;  %v945_v20 = vadd.f32 %v944_v6, %v943_v44  ;;  %v3403_v40 = vmov 0.0   ;;  %v3127_v44 = vld [vmem:[#allocation5 + $0xc] ss:$24 sps:$4 sm:$0xff]   ;;  %v3158_v6 = vld [vmem:[#allocation5 + $0x120] ss:$24 sps:$4 sm:$0xff]  }
 0x17e   : > { %v914_v50 = vadd.f32 %v913_v29, %v912_v8  ;;  %v949_v52 = vrot.slane %v948_v33, 2  ;;  %v3849_v29 = vld [vmem:[%s4143_s6 + $0x8] sm:$0xff] }
 0x17f   : > { %v921_v54 = vadd.f32 %v920_v43, %v919_v27  ;;  %v956_v57 = vrot.slane %v955_v48, 2  ;;  %1098 = vmatprep.subr.mxu1 %v3849_v29  ;;  %v3124_v43 = vld [vmem:[#allocation5 + $0x4] ss:$24 sps:$4 sm:$0xff]   ;;  %v3164_v51 = vld [vmem:[#allocation5 + $0x150] ss:$24 sps:$4 sm:$0xff]  }
 0x180   : > { %v915_v58 = vrot.slane %v914_v50, 1  ;;  %v950_v15 = vadd.f32 %v949_v52, %v948_v33  ;;  %v3855_v33 = vld [vmem:[%s4143_s6] sm:$0xff]  ;;  %1899 = vmatprep.subr.bf16.mxu0 %v3124_v43 }
 0x181   : > { %v922_v35 = vrot.slane %v921_v54, 1  ;;  %v957_v47 = vadd.f32 %v956_v57, %v955_v48  ;;  %v3130_v48 = vld [vmem:[#allocation5 + $0x34] ss:$24 sps:$4 sm:$0xff]   ;;  %1900 = vmatpush1.bf16.msra.mxu0 %v3122_v42  ;;  %v3134_v52 = vld [vmem:[#allocation5 + $0x60] ss:$24 sps:$4 sm:$0xff]  }
 0x182   : > { %v951_v11 = vrot.slane %v950_v15, 1  ;;  %v916_v0 = vadd.f32 %v915_v58, %v914_v50  ;;  %1901 = vmatprep.subr.bf16.mxu0 %v3130_v48  ;;  %v3136_v50 = vld [vmem:[#allocation5 + $0x64] ss:$24 sps:$4 sm:$0xff]   ;;  %v3140_v57 = vld [vmem:[#allocation5 + $0x90] ss:$24 sps:$4 sm:$0xff]  }
 0x183   : > { %v923_v18 = vadd.f32 %v922_v35, %v921_v54  ;;  %v958_v32 = vrot.slane %v957_v47, 1  ;;  %v3142_v54 = vld [vmem:[#allocation5 + $0x94] ss:$24 sps:$4 sm:$0xff]   ;;  %v3148_v58 = vld [vmem:[#allocation5 + $0xc4] ss:$24 sps:$4 sm:$0xff]  }
 0x184   : > { %v952_v9 = vadd.f32 %v951_v11, %v950_v15  ;;  %v965_v27 = vsel %vm964_vm5, %v916_v0, %v902_v23  ;;  %v3154_v15 = vld [vmem:[#allocation5 + $0xf4] ss:$24 sps:$4 sm:$0xff]   ;;  %v3160_v35 = vld [vmem:[#allocation5 + $0x124] ss:$24 sps:$4 sm:$0xff]   ;;  %v3176_v0 = vld [vmem:[#allocation5 + $0x1b0] ss:$24 sps:$4 sm:$0xff]  }
 0x185   : > { %v959_v21 = vadd.f32 %v958_v32, %v957_v47  ;;  %v966_v3 = vsel %vm964_vm5, %v923_v18, %v909_v46  ;;  %1902 = vmatpush1.bf16.msra.mxu0 %v3128_v49  ;;  %v3166_v47 = vld [vmem:[#allocation5 + $0x154] ss:$24 sps:$4 sm:$0xff]   ;;  %v3172_v11 = vld [vmem:[#allocation5 + $0x184] ss:$24 sps:$4 sm:$0xff]   ;;  %v3170_v18 = vld [vmem:[#allocation5 + $0x180] ss:$24 sps:$4 sm:$0xff]  }
 0x186   : > { %v974_v24 = vsel %vm973_vm4, %v952_v9, %v938_v37  ;;  %1903 = vmatprep.subr.bf16.mxu0 %v3136_v50  ;;  %v3178_v32 = vld [vmem:[#allocation5 + $0x1b4] ss:$24 sps:$4 sm:$0xff]   ;;  %v3131_v42 = vld [vmem:[#allocation5 + $0x38] ss:$24 sps:$4 sm:$0xff]  }
 0x187   : > { %v975_v8 = vsel %vm973_vm4, %v959_v21, %v945_v20  ;;  %v979_v28 = vsel %vm978_vm6, %v965_v27, %v974_v24  ;;  %v3133_v27 = vld [vmem:[#allocation5 + $0x3c] ss:$24 sps:$4 sm:$0xff]   ;;  %v3139_v43 = vld [vmem:[#allocation5 + $0x6c] ss:$24 sps:$4 sm:$0xff]   ;;  %v3143_v49 = vld [vmem:[#allocation5 + $0x98] ss:$24 sps:$4 sm:$0xff]  }
 0x188   : > { %v980_v25 = vsel %vm978_vm6, %v966_v3, %v975_v8  ;;  %v3125_v8 = vld [vmem:[#allocation5 + $0x8] ss:$24 sps:$4 sm:$0xff]   ;;  %v3145_v48 = vld [vmem:[#allocation5 + $0x9c] ss:$24 sps:$4 sm:$0xff]   ;;  %v3151_v50 = vld [vmem:[#allocation5 + $0xcc] ss:$24 sps:$4 sm:$0xff]  }
 0x189   : > { %1077 = vmatprep.mubr.f32.mxu1 %v980_v25  ;;  %1904 = vmatpush1.bf16.msra.mxu0 %v3134_v52  ;;  %v3149_v52 = vld [vmem:[#allocation5 + $0xc8] ss:$24 sps:$4 sm:$0xff]  }
 0x18a   : > { %1078 = vmatmul.mubr.f32.vlgmr.msra.gmra.mrb[16].mxu1 %v979_v28  ;;  %1905 = vmatprep.subr.bf16.mxu0 %v3142_v54  ;;  %v3157_v54 = vld [vmem:[#allocation5 + $0xfc] ss:$24 sps:$4 sm:$0xff]  }
 0x18b   : > { %1099 = vmatpush1.msra.mxu1 %v3855_v33  ;;  %1162 = vmatprep.mubr.f32.mxu1 %v3403_v40 }
 0x18c   : > { %1952 = vmatprep.subr.bf16.mxu1 %v3127_v44  ;;  %v3137_v44 = vld [vmem:[#allocation5 + $0x68] ss:$24 sps:$4 sm:$0xff]  }
 0x18d   : > { %1906 = vmatpush1.bf16.msra.mxu0 %v3140_v57  ;;  %v3155_v57 = vld [vmem:[#allocation5 + $0xf8] ss:$24 sps:$4 sm:$0xff]  }
 0x18e   : > { %1907 = vmatprep.subr.bf16.mxu0 %v3148_v58  ;;  %v3163_v58 = vld [vmem:[#allocation5 + $0x12c] ss:$24 sps:$4 sm:$0xff]  }
 0x191   : > { %1908 = vmatpush1.bf16.msra.mxu0 %v3146_v61  ;;  %v3161_v61 = vld [vmem:[#allocation5 + $0x128] ss:$24 sps:$4 sm:$0xff]  }
 0x192   : > { %1909 = vmatprep.subr.bf16.mxu0 %v3154_v15  ;;  %v3169_v15 = vld [vmem:[#allocation5 + $0x15c] ss:$24 sps:$4 sm:$0xff]  }
 0x195   : > { %1910 = vmatpush1.bf16.msra.mxu0 %v3152_v45  ;;  %v3167_v45 = vld [vmem:[#allocation5 + $0x158] ss:$24 sps:$4 sm:$0xff]  }
 0x196   : > { %1911 = vmatprep.subr.bf16.mxu0 %v3160_v35  ;;  %v3175_v35 = vld [vmem:[#allocation5 + $0x18c] ss:$24 sps:$4 sm:$0xff]  }
 0x199   : > { %1912 = vmatpush1.bf16.msra.mxu0 %v3158_v6  ;;  %v3173_v6 = vld [vmem:[#allocation5 + $0x188] ss:$24 sps:$4 sm:$0xff]  }
 0x19a   : > { %1913 = vmatprep.subr.bf16.mxu0 %v3166_v47  ;;  %v3181_v47 = vld [vmem:[#allocation5 + $0x1bc] ss:$24 sps:$4 sm:$0xff]  }
 0x19d   : > { %1914 = vmatpush1.bf16.msra.mxu0 %v3164_v51  ;;  %v3179_v51 = vld [vmem:[#allocation5 + $0x1b8] ss:$24 sps:$4 sm:$0xff]  }
 0x19e   : > { %1915 = vmatprep.subr.bf16.mxu0 %v3172_v11  ;;  %v3184_v11 = vld [vmem:[#allocation5 + $0x1e4] ss:$24 sps:$4 sm:$0xff]  }
 0x1a1   : > { %1916 = vmatpush1.bf16.msra.mxu0 %v3170_v18  ;;  %v3182_v18 = vld [vmem:[#allocation5 + $0x1e0] ss:$24 sps:$4 sm:$0xff]  }
 0x1a2   : > { %1917 = vmatprep.subr.bf16.mxu0 %v3178_v32  ;;  %v3187_v32 = vld [vmem:[#allocation5 + $0x1ec] ss:$24 sps:$4 sm:$0xff]  }
 0x1a5   : > { %1918 = vmatpush1.bf16.msra.mxu0 %v3176_v0  ;;  %v3185_v0 = vld [vmem:[#allocation5 + $0x1e8] ss:$24 sps:$4 sm:$0xff]  }
 0x1a6   : > { %1919 = vmatprep.subr.bf16.mxu0 %v3184_v11 }
 0x1a9   : > { %1920 = vmatpush1.bf16.msra.mxu0 %v3182_v18 }
 0x25d   : > { %v2879_v37 = vpop.f32.mrb[16].mxu1 }
 0x25e   : > { %v2880_v9 = vpop.f32.mrb[17].mxu1 }
 0x25f   : > { %v2881_v46 = vadd.f32 %v2880_v9, %v2879_v37  ;;  %v3190_v37 = vld [vmem:[#allocation5 + $0x214] ss:$24 sps:$4 sm:$0xff]   ;;  %v3188_v9 = vld [vmem:[#allocation5 + $0x210] ss:$24 sps:$4 sm:$0xff]  }
 0x260   : > { %1921 = vmatprep.subr.bf16.mxu0 %v3190_v37 }
 0x261   : > { %v1083_v20 = vmul.f32 0.00048828125, %v2881_v46  ;;  %v3193_v46 = vld [vmem:[#allocation5 + $0x21c] ss:$24 sps:$4 sm:$0xff]   ;;  %1922 = vmatpush1.bf16.msra.mxu0 %v3188_v9 }
 0x263   : > { %v1084_v21 = vmul.f32 %v1083_v20, %v1083_v20 }
 0x265   : > { %v1086_v23 = vrot.slane %v1084_v21, 6  ;;  %v3196_v21 = vld [vmem:[#allocation5 + $0x244] ss:$24 sps:$4 sm:$0xff]  }
 0x266   : > { %1923 = vmatprep.subr.bf16.mxu0 %v3196_v21 }
 0x267   : > { %v1088_v24 = vsub.f32 %v1083_v20, %v1086_v23  ;;  %v3194_v23 = vld [vmem:[#allocation5 + $0x240] ss:$24 sps:$4 sm:$0xff]  }
 0x268   : > { %1924 = vmatpush1.bf16.msra.mxu0 %v3194_v23 }
 0x269   : > { %v1089_v3 = vadd.f32 1e-05, %v1088_v24  ;;  %v3199_v24 = vld [vmem:[#allocation5 + $0x24c] ss:$24 sps:$4 sm:$0xff]  }
 0x26b   : > { %3266 = vrsqrt.f32 %v1089_v3  ;;  %v3197_v3 = vld [vmem:[#allocation5 + $0x248] ss:$24 sps:$4 sm:$0xff]  }
 0x275   : > { %v3267_v25 = vpop.eup %3266 }
 0x276   : > { %v1091_v28 = vsel %vm978_vm6, %v1083_v20, %v3267_v25  ;;  %v3191_v20 = vld [vmem:[#allocation5 + $0x218] ss:$24 sps:$4 sm:$0xff]  }
 0x277   : > { %2737 = vmatmul.mubr.msk.f32.vlgmr.msra.gmra.mrb[18].mxu1 %vm1094_vm7, %v1091_v28  ;;  %v3200_v25 = vld [vmem:[#allocation5 + $0x270] ss:$24 sps:$4 sm:$0xff]  }
 0x278   : > { %1953 = vmatpush1.bf16.msra.mxu1 %v3125_v8  ;;  %v3202_v8 = vld [vmem:[#allocation5 + $0x274] ss:$24 sps:$4 sm:$0xff]   ;;  %v3203_v28 = vld [vmem:[#allocation5 + $0x278] ss:$24 sps:$4 sm:$0xff]  }
 0x279   : > { %1954 = vmatprep.subr.bf16.mxu1 %v3133_v27  ;;  %v3205_v27 = vld [vmem:[#allocation5 + $0x27c] ss:$24 sps:$4 sm:$0xff]   ;;  %1925 = vmatprep.subr.bf16.mxu0 %v3202_v8 }
 0x27a   : > { %1926 = vmatpush1.bf16.msra.mxu0 %v3200_v25 }
 0x27c   : > { %1955 = vmatpush1.bf16.msra.mxu1 %v3131_v42  ;;  %v3208_v42 = vld [vmem:[#allocation5 + $0x2a4] ss:$24 sps:$4 sm:$0xff]  }
 0x27d   : > { %1956 = vmatprep.subr.bf16.mxu1 %v3139_v43  ;;  %v3206_v43 = vld [vmem:[#allocation5 + $0x2a0] ss:$24 sps:$4 sm:$0xff]   ;;  %1927 = vmatprep.subr.bf16.mxu0 %v3208_v42 }
 0x27e   : > { %1928 = vmatpush1.bf16.msra.mxu0 %v3206_v43 }
 0x280   : > { %1957 = vmatpush1.bf16.msra.mxu1 %v3137_v44  ;;  %v3211_v44 = vld [vmem:[#allocation5 + $0x2ac] ss:$24 sps:$4 sm:$0xff]  }
 0x281   : > { %1958 = vmatprep.subr.bf16.mxu1 %v3145_v48  ;;  %v3209_v48 = vld [vmem:[#allocation5 + $0x2a8] ss:$24 sps:$4 sm:$0xff]  }
 0x284   : > { %1959 = vmatpush1.bf16.msra.mxu1 %v3143_v49  ;;  %v3212_v49 = vld [vmem:[#allocation5 + $0x2d0] ss:$24 sps:$4 sm:$0xff]  }
 0x285   : > { %1960 = vmatprep.subr.bf16.mxu1 %v3151_v50  ;;  %v3214_v50 = vld [vmem:[#allocation5 + $0x2d4] ss:$24 sps:$4 sm:$0xff]  }
 0x286   : > { %1929 = vmatprep.subr.bf16.mxu0 %v3214_v50 }
 0x287   : > { %1930 = vmatpush1.bf16.msra.mxu0 %v3212_v49 }
 0x288   : > { %1961 = vmatpush1.bf16.msra.mxu1 %v3149_v52  ;;  %v3215_v52 = vld [vmem:[#allocation5 + $0x2d8] ss:$24 sps:$4 sm:$0xff]  }
 0x289   : > { %1962 = vmatprep.subr.bf16.mxu1 %v3157_v54  ;;  %v3217_v54 = vld [vmem:[#allocation5 + $0x2dc] ss:$24 sps:$4 sm:$0xff]  }
 0x28c   : > { %1963 = vmatpush1.bf16.msra.mxu1 %v3155_v57  ;;  %v3220_v57 = vld [vmem:[#allocation5 + $0x14] ss:$24 sps:$4 sm:$0xff]  }
 0x28d   : > { %1964 = vmatprep.subr.bf16.mxu1 %v3163_v58  ;;  %2005 = vmatprep.subr.bf16.mxu0 %v3220_v57  ;;  %v2735_v58 = vld [vmem:[%s4141_s4 + $0x1] ss:$8 sm:$0x3] }
 0x290   : > { %1965 = vmatpush1.bf16.msra.mxu1 %v3161_v61  ;;  %v3404_v61 = vmov 1966171168  }
 0x291   : > { %1966 = vmatprep.subr.bf16.mxu1 %v3169_v15  ;;  %v1205_v15 = vunpack.c.l.s4 %v3404_v61 }
 0x294   : > { %1967 = vmatpush1.bf16.msra.mxu1 %v3167_v45  ;;  %v1173_v45 = vrot.slane %v2735_v58, %v3768_v38 }
 0x295   : > { %1968 = vmatprep.subr.bf16.mxu1 %v3175_v35  ;;  %v1177_v35 = vrot.slane %v2735_v58, %v3777_v41 }
 0x298   : > { %1969 = vmatpush1.bf16.msra.mxu1 %v3173_v6  ;;  %v1206_v6 = vunpack.c.0.s8 %v1205_v15 }
 0x299   : > { %1970 = vmatprep.subr.bf16.mxu1 %v3181_v47  ;;  %v2736_v47 = vld [vmem:[%s4141_s4 + $0x2] ss:$8 sm:$0x3] }
 0x29a   : > { %v1194_v37 = vrot.slane %v2736_v47, %v3768_v38 }
 0x29c   : > { %1971 = vmatpush1.bf16.msra.mxu1 %v3179_v51 }
 0x29d   : > { %1972 = vmatprep.subr.bf16.mxu1 %v3187_v32  ;;  %v3871_v32 = vsub.s32 %v1206_v6, %v3729_v36 }
 0x2a0   : > { %1973 = vmatpush1.bf16.msra.mxu1 %v3185_v0 }
 0x2a1   : > { %1974 = vmatprep.subr.bf16.mxu1 %v3193_v46  ;;  %v1198_v46 = vrot.slane %v2736_v47, %v3777_v41 }
 0x2a4   : > { %1975 = vmatpush1.bf16.msra.mxu1 %v3191_v20 }
 0x2a5   : > { %1976 = vmatprep.subr.bf16.mxu1 %v3199_v24 }
 0x2a8   : > { %1977 = vmatpush1.bf16.msra.mxu1 %v3197_v3 }
 0x2a9   : > { %1978 = vmatprep.subr.bf16.mxu1 %v3205_v27 }
 0x2ac   : > { %1979 = vmatpush1.bf16.msra.mxu1 %v3203_v28 }
 0x2ad   : > { %1980 = vmatprep.subr.bf16.mxu1 %v3211_v44 }
 0x2b0   : > { %1981 = vmatpush1.bf16.msra.mxu1 %v3209_v48 }
 0x2b1   : > { %1982 = vmatprep.subr.bf16.mxu1 %v3217_v54 }
 0x2b4   : > { %1983 = vmatpush1.bf16.msra.mxu1 %v3215_v52 }
 0x2b5   : > { %2309 = vmatprep.subr.mxu1 %v3849_v29 }
 0x34a   : > { %v1164_v51 = vpop.f32.mrb[18].mxu1 }
 0x34b   : > { %v1180_v11 = vmul.f32 %v1173_v45, %v1164_v51  ;;  %v1166_v18 = vpop.f32.mrb[19].mxu1 }
 0x34c   : > { %v1181_v29 = vmul.f32 %v1177_v35, %v1166_v18 }
 0x34d   : > { %v1184_v0 = vrot.slane %v1180_v11, 2 }
 0x34e   : > { %v1185_v9 = vrot.slane %v1181_v29, 2  ;;  %v1203_v20 = vcombine.low %v1180_v11, %v1181_v29 }
 0x34f   : > { %v1188_v21 = vmul.f32 %v1184_v0, %v1164_v51 }
 0x350   : > { %v1189_v23 = vmul.f32 %v1185_v9, %v1166_v18  ;;  %v1210_v24 = vrot.slane %v1203_v20, %v3871_v32 }
 0x351   : > { %v1201_v3 = vsub.f32 %v1194_v37, %v1188_v21 }
 0x352   : > { %v1202_v8 = vsub.f32 %v1198_v46, %v1189_v23  ;;  %v1211_v25 = vcombine.high %v1210_v24, %v1210_v24  ;;  %v1218_v27 = vrot.slane %v1210_v24, %v3871_v32 }
 0x354   : > { %v1225_v28 = vrot.slane %v1211_v25, %v3871_v32  ;;  %v1226_v42 = vcombine.high %v1218_v27, %v1218_v27  ;;  %v1258_v43 = vcombine.low %v1201_v3, %v1202_v8  ;;  %v3218_v25 = vld [vmem:[#allocation5 + $0x10] ss:$24 sps:$4 sm:$0xff]  }
 0x356   : > { %v1227_v44 = vcombine.high %v1225_v28, %v1225_v28  ;;  %v1231_v48 = vrot.slane %v1226_v42, %v3768_v38  ;;  %v1235_v49 = vrot.slane %v1226_v42, %v3777_v41  ;;  %v1265_v50 = vrot.slane %v1258_v43, %v3871_v32 }
 0x358   : > { %v1248_v52 = vmul.f32 %v1231_v48, %v3789_v63  ;;  %v1266_v54 = vcombine.high %v1265_v50, %v1265_v50  ;;  %v1273_v57 = vrot.slane %v1265_v50, %v3871_v32  ;;  %v1250_v58 = vmul.f32 %v1231_v48, %v3795_v14  ;;  %v3226_v50 = vld [vmem:[#allocation5 + $0x74] ss:$24 sps:$4 sm:$0xff]  }
 0x359   : > { %v1249_v61 = vmul.f32 %v1235_v49, %v3793_v5  ;;  %v1243_v15 = vrot.slane %v1227_v44, %v3777_v41  ;;  %v1239_v45 = vrot.slane %v1227_v44, %v3768_v38  ;;  %v1251_v6 = vmul.f32 %v1235_v49, %v3797_v17  ;;  %v3221_v49 = vld [vmem:[#allocation5 + $0x40] ss:$24 sps:$4 sm:$0xff]  }
 0x35a   : > { %v1284_v35 = vrot.slane %v1273_v57, %v3768_v38  ;;  %v1288_v47 = vrot.slane %v1273_v57, %v3777_v41  ;;  %v1280_v51 = vrot.slane %v1266_v54, %v3871_v32  ;;  %v3229_v54 = vld [vmem:[#allocation5 + $0xa4] ss:$24 sps:$4 sm:$0xff]   ;;  %v3227_v57 = vld [vmem:[#allocation5 + $0xa0] ss:$24 sps:$4 sm:$0xff]  }
 0x35b   : > { %v1253_v63 = vmul.f32 %v1243_v15, %v3822_v60  ;;  %v1255_v11 = vmul.f32 %v1243_v15, %v3826_v2  ;;  %v1252_v37 = vmul.f32 %v1239_v45, %v3820_v55  ;;  %v1254_v9 = vmul.f32 %v1239_v45, %v3824_v12  ;;  %v3223_v12 = vld [vmem:[#allocation5 + $0x44] ss:$24 sps:$4 sm:$0xff]   ;;  %v3233_v15 = vld [vmem:[#allocation5 + $0x100] ss:$24 sps:$4 sm:$0xff]   ;;  %v3238_v45 = vld [vmem:[#allocation5 + $0x134] ss:$24 sps:$4 sm:$0xff]  }
 0x35c   : > { %v1301_v18 = vadd.f32 %v1284_v35, %v1248_v52  ;;  %v1303_v14 = vadd.f32 %v1284_v35, %v1250_v58  ;;  %v1302_v29 = vadd.f32 %v1288_v47, %v1249_v61  ;;  %v1304_v5 = vadd.f32 %v1288_v47, %v1251_v6  ;;  %v3224_v52 = vld [vmem:[#allocation5 + $0x70] ss:$24 sps:$4 sm:$0xff]   ;;  %v3232_v58 = vld [vmem:[#allocation5 + $0xd4] ss:$24 sps:$4 sm:$0xff]   ;;  %v3235_v61 = vld [vmem:[#allocation5 + $0x104] ss:$24 sps:$4 sm:$0xff]  }
 0x35d   : > { %v1296_v0 = vrot.slane %v1280_v51, %v3777_v41  ;;  %v1292_v17 = vrot.slane %v1280_v51, %v3768_v38  ;;  %v3236_v35 = vld [vmem:[#allocation5 + $0x130] ss:$24 sps:$4 sm:$0xff]   ;;  %v3241_v6 = vld [vmem:[#allocation5 + $0x164] ss:$24 sps:$4 sm:$0xff]   ;;  %v3239_v47 = vld [vmem:[#allocation5 + $0x160] ss:$24 sps:$4 sm:$0xff]  }
 0x35e   : > { %v1310_v46 = vmax.f32 %v1302_v29, 0.0  ;;  %v1312_v20 = vmax.f32 %v1304_v5, 0.0  ;;  %v1309_v21 = vmax.f32 %v1301_v18, 0.0  ;;  %v1311_v23 = vmax.f32 %v1303_v14, 0.0  ;;  %v3244_v51 = vld [vmem:[#allocation5 + $0x194] ss:$24 sps:$4 sm:$0xff]  }
 0x35f   : > { %v1306_v24 = vadd.f32 %v1296_v0, %v1253_v63  ;;  %v1308_v60 = vadd.f32 %v1296_v0, %v1255_v11  ;;  %v1305_v3 = vadd.f32 %v1292_v17, %v1252_v37  ;;  %v1307_v2 = vadd.f32 %v1292_v17, %v1254_v9  ;;  %v3242_v63 = vld [vmem:[#allocation5 + $0x190] ss:$24 sps:$4 sm:$0xff]   ;;  %v3245_v11 = vld [vmem:[#allocation5 + $0x1c0] ss:$24 sps:$4 sm:$0xff]   ;;  %v3250_v18 = vld [vmem:[#allocation5 + $0x1f4] ss:$24 sps:$4 sm:$0xff]  }
 0x360   : > { %v1318_v8 = vpack.c.bf16 %v1312_v20, %v1310_v46  ;;  %v3897_v27 = vpack.c.bf16 %v1311_v23, %v1309_v21  ;;  %v3248_v14 = vld [vmem:[#allocation5 + $0x1f0] ss:$24 sps:$4 sm:$0xff]   ;;  %v3253_v29 = vld [vmem:[#allocation5 + $0x224] ss:$24 sps:$4 sm:$0xff]   ;;  %v3251_v5 = vld [vmem:[#allocation5 + $0x220] ss:$24 sps:$4 sm:$0xff]  }
 0x361   : > { %v1314_v28 = vmax.f32 %v1306_v24, 0.0  ;;  %v1316_v42 = vmax.f32 %v1308_v60, 0.0  ;;  %v1313_v43 = vmax.f32 %v1305_v3, 0.0  ;;  %v1315_v55 = vmax.f32 %v1307_v2, 0.0  ;;  %v3256_v0 = vld [vmem:[#allocation5 + $0x254] ss:$24 sps:$4 sm:$0xff]  }
 0x362   : > { %1931 = vmatprep.mubr.bf16.mxu0 %v1318_v8  ;;  %1984 = vmatprep.mubr.bf16.mxu1 %v1318_v8  ;;  %v3254_v37 = vld [vmem:[#allocation5 + $0x250] ss:$24 sps:$4 sm:$0xff]   ;;  %v3259_v9 = vld [vmem:[#allocation5 + $0x284] ss:$24 sps:$4 sm:$0xff]   ;;  %v3257_v17 = vld [vmem:[#allocation5 + $0x280] ss:$24 sps:$4 sm:$0xff]  }
 0x363   : > { %1932 = vmatmul.mubr.bf16.vlgmr.msra.gmra.mrb[8].mxu0 %v3897_v27  ;;  %1985 = vmatmul.mubr.bf16.vlgmr.msra.gmra.mrb[20].mxu1 %v3897_v27  ;;  %v3901_v44 = vpack.c.bf16 %v1316_v42, %v1314_v28  ;;  %v3903_v48 = vpack.c.bf16 %v1315_v55, %v1313_v43  ;;  %v3262_v46 = vld [vmem:[#allocation5 + $0x2b4] ss:$24 sps:$4 sm:$0xff]   ;;  %v3260_v20 = vld [vmem:[#allocation5 + $0x2b0] ss:$24 sps:$4 sm:$0xff]   ;;  %v3265_v21 = vld [vmem:[#allocation5 + $0x2e4] ss:$24 sps:$4 sm:$0xff]  }
 0x364   : > { %2006 = vmatpush1.bf16.msra.mxu0 %v3218_v25  ;;  %2310 = vmatpush1.msra.mxu1 %v3855_v33  ;;  %v3230_v33 = vld [vmem:[#allocation5 + $0xd0] ss:$24 sps:$4 sm:$0xff]   ;;  %v3263_v23 = vld [vmem:[#allocation5 + $0x2e0] ss:$24 sps:$4 sm:$0xff]  }
 0x365   : > { %1941 = vmatprep.mubr.bf16.mxu0 %v3901_v44  ;;  %1994 = vmatprep.mubr.bf16.mxu1 %v3901_v44 }
 0x366   : > { %2007 = vmatprep.subr.bf16.mxu0 %v3223_v12 }
 0x368   : > { %2008 = vmatpush1.bf16.msra.mxu0 %v3221_v49 }
 0x369   : > { %2009 = vmatprep.subr.bf16.mxu0 %v3226_v50 }
 0x36b   : > { %1942 = vmatmul.mubr.bf16.gmra.mrb[12].mxu0 %v3903_v48  ;;  %1995 = vmatmul.mubr.bf16.gmra.mrb[24].mxu1 %v3903_v48 }
 0x36c   : > { %2010 = vmatpush1.bf16.msra.mxu0 %v3224_v52  ;;  %2037 = vmatprep.mubr.bf16.mxu0 %v1318_v8 }
 0x36d   : > { %2011 = vmatprep.subr.bf16.mxu0 %v3229_v54  ;;  %2373 = vmatprep.mubr.f32.mxu1 %v3403_v40  ;;  %v3247_v40 = vld [vmem:[#allocation5 + $0x1c4] ss:$24 sps:$4 sm:$0xff]  }
 0x370   : > { %2012 = vmatpush1.bf16.msra.mxu0 %v3227_v57 }
 0x371   : > { %2013 = vmatprep.subr.bf16.mxu0 %v3232_v58 }
 0x374   : > { %2014 = vmatpush1.bf16.msra.mxu0 %v3230_v33 }
 0x375   : > { %2015 = vmatprep.subr.bf16.mxu0 %v3235_v61 }
 0x378   : > { %2016 = vmatpush1.bf16.msra.mxu0 %v3233_v15 }
 0x379   : > { %2017 = vmatprep.subr.bf16.mxu0 %v3238_v45 }
 0x37c   : > { %2018 = vmatpush1.bf16.msra.mxu0 %v3236_v35 }
 0x37d   : > { %2019 = vmatprep.subr.bf16.mxu0 %v3241_v6 }
 0x380   : > { %2020 = vmatpush1.bf16.msra.mxu0 %v3239_v47 }
 0x381   : > { %2021 = vmatprep.subr.bf16.mxu0 %v3244_v51 }
 0x384   : > { %2022 = vmatpush1.bf16.msra.mxu0 %v3242_v63 }
 0x385   : > { %2023 = vmatprep.subr.bf16.mxu0 %v3247_v40 }
 0x388   : > { %2024 = vmatpush1.bf16.msra.mxu0 %v3245_v11  ;;  %v2738_v11 = vld [vmem:[%s4141_s4 + $0x3] ss:$8 sm:$0x3] }
 0x389   : > { %2025 = vmatprep.subr.bf16.mxu0 %v3250_v18 }
 0x38c   : > { %2026 = vmatpush1.bf16.msra.mxu0 %v3248_v14 }
 0x38d   : > { %2027 = vmatprep.subr.bf16.mxu0 %v3253_v29 }
 0x390   : > { %2028 = vmatpush1.bf16.msra.mxu0 %v3251_v5 }
 0x391   : > { %2029 = vmatprep.subr.bf16.mxu0 %v3256_v0 }
 0x394   : > { %2030 = vmatpush1.bf16.msra.mxu0 %v3254_v37  ;;  %v2126_v37 = vrot.slane %v2738_v11, %v3768_v38 }
 0x395   : > { %2031 = vmatprep.subr.bf16.mxu0 %v3259_v9 }
 0x398   : > { %2032 = vmatpush1.bf16.msra.mxu0 %v3257_v17 }
 0x399   : > { %2033 = vmatprep.subr.bf16.mxu0 %v3262_v46 }
 0x39c   : > { %2034 = vmatpush1.bf16.msra.mxu0 %v3260_v20 }
 0x39d   : > { %2035 = vmatprep.subr.bf16.mxu0 %v3265_v21 }
 0x3a0   : > { %2036 = vmatpush1.bf16.msra.mxu0 %v3263_v23  ;;  %v2130_v23 = vrot.slane %v2738_v11, %v3777_v41 }
 0x3a1   : > { %2950 = vmatprep.subr.bf16.mxu0 %v3591_v53 }
 0x3a3   : > { %2038 = vmatmul.mubr.bf16.vlgmr.msra.gmra.mrb[16].mxu0 %v3897_v27 }
 0x3a4   : > { %2047 = vmatprep.mubr.bf16.mxu0 %v3901_v44  ;;  %2952 = vmatpush3.bf16.msra.mxu0 %v3599_v56 }
 0x3a5   : > { %2954 = vmatprep.subr.bf16.mxu0 %v3609_v59 }
 0x3a8   : > { %2956 = vmatpush3.bf16.msra.mxu0 %v3617_v62 }
 0x3a9   : > { %2958 = vmatprep.subr.bf16.mxu0 %v3627_v1 }
 0x3ab   : > { %2048 = vmatmul.mubr.bf16.gmra.mrb[20].mxu0 %v3903_v48 }
 0x3ac   : > { %2960 = vmatpush3.bf16.msra.mxu0 %v3635_v4 }
 0x3ad   : > { %2962 = vmatprep.subr.bf16.mxu0 %v3645_v7 }
 0x3b0   : > { %2964 = vmatpush3.bf16.msra.mxu0 %v3653_v10 }
 0x3b1   : > { %2966 = vmatprep.subr.bf16.mxu0 %v3663_v13 }
 0x3b4   : > { %2968 = vmatpush3.bf16.msra.mxu0 %v3671_v16 }
 0x3b5   : > { %2970 = vmatprep.subr.bf16.mxu0 %v3681_v19 }
 0x3b8   : > { %2972 = vmatpush3.bf16.msra.mxu0 %v3689_v22 }
 0x3b9   : > { %2974 = vmatprep.subr.bf16.mxu0 %v3702_v26 }
 0x3bc   : > { %2976 = vmatpush3.bf16.msra.mxu0 %v3713_v30 }
 0x3bd   : > { %2978 = vmatprep.subr.bf16.mxu0 %v3715_v31 }
 0x3c0   : > { %2980 = vmatpush3.bf16.msra.mxu0 %v3725_v34 }
 0x436   : > { %v1933_v53 = vpop.f32.mrb[8].mxu0  ;;  %v1986_v56 = vpop.f32.mrb[20].mxu1 }
 0x437   : > { %v1935_v59 = vpop.f32.mrb[9].mxu0  ;;  %v1988_v62 = vpop.f32.mrb[21].mxu1  ;;  %v2058_v7 = vrot.slane %v1933_v53, 7 }
 0x438   : > { %v1937_v1 = vpop.f32.mrb[10].mxu0  ;;  %v1990_v4 = vpop.f32.mrb[22].mxu1  ;;  %v2059_v19 = vrot.slane %v1935_v59, 7 }
 0x439   : > { %v2060_v10 = vrot.slane %v1937_v1, 7  ;;  %v1939_v13 = vpop.f32.mrb[11].mxu0  ;;  %v1992_v16 = vpop.f32.mrb[23].mxu1 }
 0x43a   : > { %v2061_v22 = vrot.slane %v1939_v13, 7 }
 0x43b   : > { %v2070_v26 = vsel %vm815_vm0, %v2058_v7, %v2060_v10 }
 0x43c   : > { %v2084_v30 = vadd.f32 %v2070_v26, %v1990_v4  ;;  %v2071_v31 = vsel %vm815_vm0, %v2059_v19, %v2061_v22 }
 0x43d   : > { %v3934_v34 = vadd.f32 %v2071_v31, %v1992_v16 }
 0x43e   : > { %v1943_v24 = vpop.f32.mrb[12].mxu0  ;;  %v1996_v60 = vpop.f32.mrb[24].mxu1 }
 0x43f   : > { %v2062_v3 = vrot.slane %v1943_v24, 7  ;;  %v1945_v2 = vpop.f32.mrb[13].mxu0  ;;  %v1998_v8 = vpop.f32.mrb[25].mxu1 }
 0x440   : > { %v2063_v25 = vrot.slane %v1945_v2, 7  ;;  %v1947_v27 = vpop.f32.mrb[14].mxu0  ;;  %v2000_v28 = vpop.f32.mrb[26].mxu1 }
 0x441   : > { %v2068_v42 = vsel %vm815_vm0, %v2060_v10, %v2062_v3  ;;  %v2064_v43 = vrot.slane %v1947_v27, 7  ;;  %v1949_v55 = vpop.f32.mrb[15].mxu0  ;;  %v2002_v12 = vpop.f32.mrb[27].mxu1 }
 0x442   : > { %v2078_v44 = vsel %vm339_vm2, %v2068_v42, 0.0  ;;  %v2069_v48 = vsel %vm815_vm0, %v2061_v22, %v2063_v25  ;;  %v2065_v49 = vrot.slane %v1949_v55, 7 }
 0x443   : > { %v2086_v50 = vadd.f32 %v2078_v44, %v1996_v60  ;;  %v2079_v52 = vsel %vm339_vm2, %v2069_v48, 0.0  ;;  %v2072_v54 = vsel %vm815_vm0, %v2064_v43, %v2058_v7  ;;  %v2066_v57 = vsel %vm815_vm0, %v2062_v3, %v2064_v43 }
 0x444   : > { %v2087_v58 = vadd.f32 %v2079_v52, %v1998_v8  ;;  %v2074_v33 = vsel %vm339_vm2, %v2072_v54, 0.0  ;;  %v2088_v61 = vadd.f32 %v2066_v57, %v2000_v28  ;;  %v2073_v15 = vsel %vm815_vm0, %v2065_v49, %v2059_v19 }
 0x445   : > { %v2082_v45 = vadd.f32 %v2074_v33, %v1986_v56  ;;  %v2075_v35 = vsel %vm339_vm2, %v2073_v15, 0.0  ;;  %v2067_v6 = vsel %vm815_vm0, %v2063_v25, %v2065_v49 }
 0x446   : > { %v2083_v47 = vadd.f32 %v2075_v35, %v1988_v62  ;;  %v2089_v51 = vadd.f32 %v2067_v6, %v2002_v12 }
 0x476   : > { %v2039_v63 = vpop.f32.mrb[16].mxu0 }
 0x477   : > { %v2041_v40 = vpop.f32.mrb[17].mxu0  ;;  %v2090_v14 = vrot.slane %v2039_v63, 1 }
 0x478   : > { %v2043_v18 = vpop.f32.mrb[18].mxu0  ;;  %v2091_v0 = vrot.slane %v2041_v40, 1 }
 0x479   : > { %v2092_v29 = vrot.slane %v2043_v18, 1  ;;  %v2045_v5 = vpop.f32.mrb[19].mxu0 }
 0x47a   : > { %v2093_v9 = vrot.slane %v2045_v5, 1 }
 0x47b   : > { %v2102_v17 = vsel %vm848_vm1, %v2090_v14, %v2092_v29 }
 0x47c   : > { %v2114_v46 = vadd.f32 %v2102_v17, %v2082_v45  ;;  %v2103_v20 = vsel %vm848_vm1, %v2091_v0, %v2093_v9 }
 0x47d   : > { %v2115_v21 = vadd.f32 %v2103_v20, %v2083_v47 }
 0x47e   : > { %v3965_v53 = vadd.f32 %v2126_v37, %v2114_v46  ;;  %v2049_v56 = vpop.f32.mrb[20].mxu0 }
 0x47f   : > { %v2094_v59 = vrot.slane %v2049_v56, 1  ;;  %v2051_v62 = vpop.f32.mrb[21].mxu0  ;;  %v3967_v7 = vadd.f32 %v2130_v23, %v2115_v21 }
 0x480   : > { %v2095_v1 = vrot.slane %v2051_v62, 1  ;;  %v2053_v4 = vpop.f32.mrb[22].mxu0  ;;  %v2173_v19 = vmul.f32 %v3965_v53, %v3965_v53 }
 0x481   : > { %v2100_v10 = vsel %vm848_vm1, %v2092_v29, %v2094_v59  ;;  %v2096_v13 = vrot.slane %v2053_v4, 1  ;;  %v2055_v16 = vpop.f32.mrb[23].mxu0  ;;  %v2174_v12 = vmul.f32 %v3967_v7, %v3967_v7 }
 0x482   : > { %v2108_v22 = vsel %vm342_vm3, %v2100_v10, 0.0  ;;  %v2101_v26 = vsel %vm848_vm1, %v2093_v9, %v2095_v1  ;;  %v2097_v31 = vrot.slane %v2055_v16, 1 }
 0x483   : > { %v2116_v24 = vadd.f32 %v2108_v22, %v2084_v30  ;;  %v2109_v60 = vsel %vm342_vm3, %v2101_v26, 0.0  ;;  %v2098_v3 = vsel %vm848_vm1, %v2094_v59, %v2096_v13  ;;  %v2104_v2 = vsel %vm848_vm1, %v2096_v13, %v2090_v14 }
 0x484   : > { %v2117_v8 = vadd.f32 %v2109_v60, %v3934_v34  ;;  %v2112_v25 = vsel %vm342_vm3, %v2104_v2, 0.0  ;;  %v2118_v27 = vadd.f32 %v2098_v3, %v2086_v50  ;;  %v2099_v28 = vsel %vm848_vm1, %v2095_v1, %v2097_v31 }
 0x485   : > { %v3988_v42 = vadd.f32 %v2126_v37, %v2116_v24  ;;  %v2120_v30 = vadd.f32 %v2112_v25, %v2088_v61  ;;  %v2105_v43 = vsel %vm848_vm1, %v2097_v31, %v2091_v0  ;;  %v2119_v55 = vadd.f32 %v2099_v28, %v2087_v58 }
 0x486   : > { %v3994_v44 = vadd.f32 %v2130_v23, %v2117_v8  ;;  %v3996_v34 = vadd.f32 %v2126_v37, %v2118_v27  ;;  %v2113_v48 = vsel %vm342_vm3, %v2105_v43, 0.0 }
 0x487   : > { %v2145_v49 = vadd.f32 %v3988_v42, %v3965_v53  ;;  %v2175_v50 = vmul.f32 %v3988_v42, %v3988_v42  ;;  %v4004_v52 = vadd.f32 %v2126_v37, %v2120_v30  ;;  %v2121_v36 = vadd.f32 %v2113_v48, %v2089_v51 }
 0x488   : > { %v2152_v54 = vadd.f32 %v3994_v44, %v3967_v7  ;;  %v2176_v57 = vmul.f32 %v3994_v44, %v3994_v44  ;;  %v2177_v58 = vmul.f32 %v3996_v34, %v3996_v34  ;;  %v4012_v39 = vadd.f32 %v2130_v23, %v2119_v55 }
 0x489   : > { %v2146_v33 = vrot.slane %v2145_v49, 4  ;;  %v2181_v61 = vadd.f32 %v2175_v50, %v2173_v19  ;;  %v2159_v15 = vadd.f32 %v4004_v52, %v3996_v34  ;;  %v2179_v45 = vmul.f32 %v4004_v52, %v4004_v52 }
 0x48a   : > { %v4018_v35 = vadd.f32 %v2130_v23, %v2121_v36  ;;  %v2178_v6 = vmul.f32 %v4012_v39, %v4012_v39  ;;  %v2153_v47 = vrot.slane %v2152_v54, 4  ;;  %v2188_v51 = vadd.f32 %v2176_v57, %v2174_v12 }
 0x48b   : > { %v2147_v63 = vadd.f32 %v2146_v33, %v2145_v49  ;;  %v2182_v40 = vrot.slane %v2181_v61, 4  ;;  %v2160_v11 = vrot.slane %v2159_v15, 4  ;;  %v2195_v18 = vadd.f32 %v2179_v45, %v2177_v58 }
 0x48c   : > { %v2166_v14 = vadd.f32 %v4018_v35, %v4012_v39  ;;  %v2180_v29 = vmul.f32 %v4018_v35, %v4018_v35  ;;  %v2154_v5 = vadd.f32 %v2153_v47, %v2152_v54  ;;  %v2189_v0 = vrot.slane %v2188_v51, 4 }
 0x48d   : > { %v2161_v37 = vadd.f32 %v2160_v11, %v2159_v15  ;;  %v2196_v9 = vrot.slane %v2195_v18, 4  ;;  %v2183_v17 = vadd.f32 %v2182_v40, %v2181_v61  ;;  %v2148_v56 = vrot.slane %v2147_v63, 2 }
 0x48e   : > { %v2155_v46 = vrot.slane %v2154_v5, 2  ;;  %v2167_v20 = vrot.slane %v2166_v14, 4  ;;  %v2190_v21 = vadd.f32 %v2189_v0, %v2188_v51  ;;  %v2202_v23 = vadd.f32 %v2180_v29, %v2178_v6 }
 0x48f   : > { %v2162_v59 = vrot.slane %v2161_v37, 2  ;;  %v2184_v62 = vrot.slane %v2183_v17, 2  ;;  %v2197_v1 = vadd.f32 %v2196_v9, %v2195_v18  ;;  %v2149_v3 = vadd.f32 %v2148_v56, %v2147_v63 }
 0x490   : > { %v2168_v4 = vadd.f32 %v2167_v20, %v2166_v14  ;;  %v2191_v10 = vrot.slane %v2190_v21, 2  ;;  %v2203_v13 = vrot.slane %v2202_v23, 4  ;;  %v2156_v26 = vadd.f32 %v2155_v46, %v2154_v5 }
 0x491   : > { %v2163_v16 = vadd.f32 %v2162_v59, %v2161_v37  ;;  %v2185_v19 = vadd.f32 %v2184_v62, %v2183_v17  ;;  %v2198_v22 = vrot.slane %v2197_v1, 2  ;;  %v2150_v49 = vrot.slane %v2149_v3, 1  ;;  %v2836_v59 = vld [vmem:[%s4141_s4 + $0x5] ss:$8 sm:$0x3] }
 0x492   : > { %v2169_v31 = vrot.slane %v2168_v4, 2  ;;  %v2192_v24 = vadd.f32 %v2191_v10, %v2190_v21  ;;  %v2204_v60 = vadd.f32 %v2203_v13, %v2202_v23  ;;  %v2157_v43 = vrot.slane %v2156_v26, 1  ;;  %v2835_v21 = vld [vmem:[%s4141_s4 + $0x4] ss:$8 sm:$0x3] }
 0x493   : > { %v2199_v2 = vadd.f32 %v2198_v22, %v2197_v1  ;;  %v2164_v27 = vrot.slane %v2163_v16, 1  ;;  %v2186_v28 = vrot.slane %v2185_v19, 1  ;;  %v2151_v45 = vadd.f32 %v2150_v49, %v2149_v3 }
 0x494   : > { %v2170_v8 = vadd.f32 %v2169_v31, %v2168_v4  ;;  %v2205_v25 = vrot.slane %v2204_v60, 2  ;;  %v2193_v12 = vrot.slane %v2192_v24, 1  ;;  %v2158_v33 = vadd.f32 %v2157_v43, %v2156_v26 }
 0x495   : > { %v2200_v30 = vrot.slane %v2199_v2, 1  ;;  %v2165_v57 = vadd.f32 %v2164_v27, %v2163_v16  ;;  %v2187_v58 = vadd.f32 %v2186_v28, %v2185_v19  ;;  %v2384_v23 = vrot.slane %v2835_v21, %v3768_v38 }
 0x496   : > { %v2171_v55 = vrot.slane %v2170_v8, 1  ;;  %v2206_v48 = vadd.f32 %v2205_v25, %v2204_v60  ;;  %v2194_v61 = vadd.f32 %v2193_v12, %v2192_v24  ;;  %v2388_v56 = vrot.slane %v2835_v21, %v3777_v41 }
 0x497   : > { %v2201_v50 = vadd.f32 %v2200_v30, %v2199_v2  ;;  %v2213_v40 = vsel %vm964_vm5, %v2165_v57, %v2151_v45  ;;  %v2405_v16 = vrot.slane %v2836_v59, %v3768_v38  ;;  %v2409_v22 = vrot.slane %v2836_v59, %v3777_v41 }
 0x498   : > { %v2172_v36 = vadd.f32 %v2171_v55, %v2170_v8  ;;  %v2207_v54 = vrot.slane %v2206_v48, 1 }
 0x499   : > { %v2221_v6 = vsel %vm973_vm4, %v2201_v50, %v2187_v58 }
 0x49a   : > { %v2208_v15 = vadd.f32 %v2207_v54, %v2206_v48  ;;  %v2214_v47 = vsel %vm964_vm5, %v2172_v36, %v2158_v33  ;;  %v2225_v11 = vsel %vm978_vm6, %v2213_v40, %v2221_v6 }
 0x49c   : > { %v2222_v51 = vsel %vm973_vm4, %v2208_v15, %v2194_v61 }
 0x49d   : > { %v2226_v63 = vsel %vm978_vm6, %v2214_v47, %v2222_v51 }
 0x49e   : > { %2291 = vmatprep.mubr.f32.mxu0 %v2226_v63 }
 0x49f   : > { %2292 = vmatmul.mubr.f32.vlgmr.msra.gmra.mrb[24].mxu0 %v2225_v11 }
 0x572   : > { %v2914_v18 = vpop.f32.mrb[24].mxu0 }
 0x573   : > { %v2915_v14 = vpop.f32.mrb[25].mxu0 }
 0x574   : > { %v2916_v29 = vadd.f32 %v2915_v14, %v2914_v18  ;;  %v2529_v18 = vld [vmem:[%s4061_s20 + $0x8] sm:$0xff] }
 0x576   : > { %v2297_v5 = vmul.f32 0.00048828125, %v2916_v29 }
 0x578   : > { %v2298_v0 = vmul.f32 %v2297_v5, %v2297_v5 }
 0x57a   : > { %v2300_v37 = vrot.slane %v2298_v0, 6  ;;  %v2532_v0 = vld [vmem:[%s4061_s20 + $0x20] sm:$0xff] }
 0x57c   : > { %v2302_v9 = vsub.f32 %v2297_v5, %v2300_v37 }
 0x57e   : > { %v2303_v17 = vadd.f32 1e-05, %v2302_v9 }
 0x580   : > { %3268 = vrsqrt.f32 %v2303_v17 }
 0x58a   : > { %v3269_v46 = vpop.eup %3268 }
 0x58b   : > { %v2305_v20 = vsel %vm978_vm6, %v2297_v5, %v3269_v46  ;;  %v2531_v5 = vld [vmem:[%s4061_s20 + $0x18] sm:$0xff]  ;;  %v2534_v46 = vld [vmem:[%s4061_s20 + $0x30] sm:$0xff] }
 0x58c   : > { %2837 = vmatmul.mubr.msk.f32.vlgmr.msra.gmra.mrb[28].mxu1 %vm1094_vm7, %v2305_v20  ;;  %v2535_v20 = vld [vmem:[%s4061_s20 + $0x38] sm:$0xff] }
 0x65f   : > { %v2375_v62 = vpop.f32.mrb[28].mxu1 }
 0x660   : > { %v2391_v1 = vmul.f32 %v2384_v23, %v2375_v62  ;;  %v2377_v4 = vpop.f32.mrb[29].mxu1 }
 0x661   : > { %v2392_v10 = vmul.f32 %v2388_v56, %v2377_v4 }
 0x662   : > { %v2395_v13 = vrot.slane %v2391_v1, 2 }
 0x663   : > { %v2396_v19 = vrot.slane %v2392_v10, 2  ;;  %v2414_v26 = vcombine.low %v2391_v1, %v2392_v10 }
 0x664   : > { %v2399_v31 = vmul.f32 %v2395_v13, %v2375_v62 }
 0x665   : > { %v2400_v24 = vmul.f32 %v2396_v19, %v2377_v4  ;;  %v2421_v60 = vrot.slane %v2414_v26, %v3871_v32 }
 0x666   : > { %v2412_v3 = vsub.f32 %v2405_v16, %v2399_v31 }
 0x667   : > { %v2413_v2 = vsub.f32 %v2409_v22, %v2400_v24  ;;  %v2422_v8 = vcombine.high %v2421_v60, %v2421_v60  ;;  %v2429_v25 = vrot.slane %v2421_v60, %v3871_v32 }
 0x669   : > { %v2436_v27 = vrot.slane %v2422_v8, %v3871_v32  ;;  %v2437_v28 = vcombine.high %v2429_v25, %v2429_v25  ;;  %v2469_v30 = vcombine.low %v2412_v3, %v2413_v2 }
 0x66b   : > { %v2438_v43 = vcombine.high %v2436_v27, %v2436_v27  ;;  %v2442_v55 = vrot.slane %v2437_v28, %v3768_v38  ;;  %v2446_v12 = vrot.slane %v2437_v28, %v3777_v41  ;;  %v2476_v48 = vrot.slane %v2469_v30, %v3871_v32 }
 0x66d   : > { %v2450_v49 = vrot.slane %v2438_v43, %v3768_v38  ;;  %v2454_v50 = vrot.slane %v2438_v43, %v3777_v41  ;;  %v2477_v36 = vcombine.high %v2476_v48, %v2476_v48  ;;  %v2484_v54 = vrot.slane %v2476_v48, %v3871_v32 }
 0x66e   : > { %v2459_v57 = vmul.f32 %v2442_v55, %v3965_v53  ;;  %v2460_v58 = vmul.f32 %v2446_v12, %v3967_v7  ;;  %v2461_v33 = vmul.f32 %v2442_v55, %v3988_v42  ;;  %v2462_v61 = vmul.f32 %v2446_v12, %v3994_v44 }
 0x66f   : > { %v2491_v15 = vrot.slane %v2477_v36, %v3871_v32  ;;  %v2495_v53 = vrot.slane %v2484_v54, %v3768_v38  ;;  %v2499_v7 = vrot.slane %v2484_v54, %v3777_v41  ;;  %v2463_v42 = vmul.f32 %v2450_v49, %v3996_v34  ;;  %v2528_v34 = vld [vmem:[%s4061_s20] sm:$0xff] }
 0x670   : > { %v2464_v45 = vmul.f32 %v2454_v50, %v4012_v39  ;;  %v2465_v6 = vmul.f32 %v2450_v49, %v4004_v52  ;;  %v2466_v47 = vmul.f32 %v2454_v50, %v4018_v35  ;;  %v2530_v39 = vld [vmem:[%s4061_s20 + $0x10] sm:$0xff] }
 0x671   : > { %v2503_v44 = vrot.slane %v2491_v15, %v3768_v38  ;;  %v2507_v51 = vrot.slane %v2491_v15, %v3777_v41  ;;  %v2512_v32 = vadd.f32 %v2495_v53, %v2459_v57  ;;  %v2513_v63 = vadd.f32 %v2499_v7, %v2460_v58  ;;  %v2533_v38 = vld [vmem:[%s4061_s20 + $0x28] sm:$0xff] }
 0x672   : > { %v2514_v40 = vadd.f32 %v2495_v53, %v2461_v33  ;;  %v2515_v11 = vadd.f32 %v2499_v7, %v2462_v61 }
 0x673   : > { %v2516_v14 = vadd.f32 %v2503_v44, %v2463_v42  ;;  %v2517_v29 = vadd.f32 %v2507_v51, %v2464_v45  ;;  %v2518_v52 = vadd.f32 %v2503_v44, %v2465_v6  ;;  %v2519_v35 = vadd.f32 %v2507_v51, %v2466_v47 }
 0x674   : > { %v2520_v37 = vmax.f32 %v2512_v32, 0.0  ;;  %v2521_v41 = vmax.f32 %v2513_v63, 0.0  ;;  %v2522_v9 = vmax.f32 %v2514_v40, 0.0  ;;  %v2523_v17 = vmax.f32 %v2515_v11, 0.0 }
 0x675   : > { %v2524_v21 = vmax.f32 %v2516_v14, 0.0  ;;  %v2525_v23 = vmax.f32 %v2517_v29, 0.0  ;;  %v2526_v56 = vmax.f32 %v2518_v52, 0.0  ;;  %v2527_v59 = vmax.f32 %v2519_v35, 0.0 }
 0x676   : > { %v2536_v62 = vadd.f32 %v2528_v34, %v2520_v37  ;;  %v2537_v1 = vadd.f32 %v2529_v18, %v2521_v41  ;;  %v2538_v4 = vadd.f32 %v2530_v39, %v2522_v9  ;;  %v2539_v10 = vadd.f32 %v2531_v5, %v2523_v17 }
 0x677   : > { %v2540_v13 = vadd.f32 %v2532_v0, %v2524_v21  ;;  %v2541_v16 = vadd.f32 %v2533_v38, %v2525_v23  ;;  %v2542_v19 = vadd.f32 %v2534_v46, %v2526_v56  ;;  %v2543_v22 = vadd.f32 %v2535_v20, %v2527_v59 }
 0x678   : > { %v2544_v26 = vmax.f32 %v2536_v62, 0.0  ;;  %v2545_v31 = vmax.f32 %v2537_v1, 0.0  ;;  %v2546_v24 = vmax.f32 %v2538_v4, 0.0  ;;  %v2547_v60 = vmax.f32 %v2539_v10, 0.0 }
 0x679   : > { %v2548_v3 = vmax.f32 %v2540_v13, 0.0  ;;  %v2549_v2 = vmax.f32 %v2541_v16, 0.0  ;;  %v2550_v8 = vmax.f32 %v2542_v19, 0.0  ;;  %v2551_v25 = vmax.f32 %v2543_v22, 0.0 }
 0x67a   : > { %2552 = vst [vmem:[%s320_s22] sm:$0xff] %v2544_v26  ;;  %2553 = vst [vmem:[%s320_s22 + $0x8] sm:$0xff] %v2545_v31 }
 0x67b   : > { %2554 = vst [vmem:[%s320_s22 + $0x10] sm:$0xff] %v2546_v24  ;;  %2555 = vst [vmem:[%s320_s22 + $0x18] sm:$0xff] %v2547_v60 }
 0x67c   : > { %2556 = vst [vmem:[%s320_s22 + $0x20] sm:$0xff] %v2548_v3  ;;  %2557 = vst [vmem:[%s320_s22 + $0x28] sm:$0xff] %v2549_v2 }
 0x67d   : > { %2558 = vst [vmem:[%s320_s22 + $0x30] sm:$0xff] %v2550_v8  ;;  %2559 = vst [vmem:[%s320_s22 + $0x38] sm:$0xff] %v2551_v25 }
 0x67e   : > { %3339 = shalt.err (!%p3336_p11)
}
 0x67f   : > { %s3340_s18 = scalar_lea.hbm %s4090_s9, 1024  ;;  %s3344_s20 = scalar_lea.hbm %s4144_s7, 2048 }
 0x680   : > { %p3341_p13 = scmp.ne.s32.totalorder %s4090_s9, %s3340_s18  ;;  %p3345_p6 = scmp.lt.u32.totalorder %s4090_s9, %s4144_s7 }
 0x681   : > { %p3346_p9 = scmp.lt.u32.totalorder %s3344_s20, %s3340_s18  ;;  %p3348_p10 = scmp.lt.u32.totalorder %s3340_s18, %s4090_s9 }
 0x682   : > { %p3342_p5 = pnand %p3341_p13, %p4158_p1 }
 0x683   : > { %p3347_p12 = por %p3346_p9, %p3345_p6 }
 0x684   : > { %p3343_p0 = pneg %p3342_p5 }
 0x685   : > { %p3349_p2 = por %p3348_p10, %p3347_p12 }
 0x687   : > { %p3350_p3 = pnand %p3349_p2, %p3343_p0 }
 0x689   : > { %3353 = shalt.err (!%p3350_p3)
}
 0x68a   : > { %s3406_s22 = smov 256   ;;  %s3407_s29 = smov 16  }
 0x68b   : > { %2989 = dma.vmem_to_hbm [thread:$0]  (%p4158_p1), %s4092_s23, 1024, %s4090_s9, %s4096_s28, %s3406_s22, %s3406_s22, %s3407_s29  }
 0x68c PF: > { %p3006_p4 = scmp.ge.s32.totalorder %s3396_s27, 2  ;;  %s2590_s8 = sand.u32 1, %s3384_s24  }
 0x68d   : > { %p4159_p7 = scmp.ne.s32.totalorder %s4150_s12, 0  ;;  %s2591_s15 = scalar_lea.sflag [#allocation4], %s2590_s8 }
 0x68f   : > { %p2999_p8 = pnand %p3006_p4, %p4159_p7 }
 0x691   : > { %3379 = dma.done.wait (!%p2999_p8), %s2591_s15, 1024  }
 0x692   : > { %3381 = vsyncadd (!%p2999_p8), %s2591_s15, 4294966272  ;;  %s4160_s10 = sld [smem:[#allocation11_spill]]  ;;  %p19_p11 = scmp.ge.s32.totalorder %s3473_s30, 4  }
 0x693   : > { %s4161_s24 = smov %s3388_s25  ;;  %s4162_s25 = smov %s3392_s26 }
 0x694   : > { %s4164_s27 = smov %s3473_s30  ;;  %21 = sbr.rel (!%p19_p11) target bundleno = 5 (0x5), region = 100 }
 0x698   : > { %s4163_s26 = smov %s4160_s10 }
 0x69b   :  { %2596 = vsyncpa [#allocation3], 1 }
 0x69c   :  { %2598 = vsyncpa [#allocation3 + $0x1], 1 }
 0x69d   :  { %2599 = vsyncpa [#allocation6], 1 }
 0x69e   :  { %2600 = vsyncpa [#allocation4], 1 }
 0x69f   :  { %2602 = vsyncpa [#allocation4 + $0x1], 1 }

</bundles_post_ra>
